<compile_context>
chip_gen: v6e
topology: v6e:2x2x1
jax: 0.10.0
libtpu: 0.0.40
codegen_flags: <defaults>
</compile_context>

<pallas_src>
import functools

import jax
import jax.numpy as jnp
from jax.experimental import pallas as pl
from jax.experimental.pallas import tpu as pltpu

CONV_SIZE = 100   # logical channel count of both conv stages (torch CONV_SIZE)
C_PAD = 128       # channel dim padded to a full 128-lane vreg
LEAKY_SLOPE = 0.2
BN_EPS = 1e-5

# rows of the packed per-channel / bias vector slab (width = samples * C_PAD)
_ENC_B1, _ENC_G1, _ENC_BE1 = 0, 1, 2
_ENC_B2, _ENC_G2, _ENC_BE2 = 3, 4, 5
_TCV_B1, _TCV_G1, _TCV_BE1 = 6, 7, 8
_TCV_B2, _NET_B, _MV_B, _DEC_B1, _DEC_B2 = 9, 10, 11, 12, 13
_N_VEC_ROWS = 14


# ----------------------------- in-kernel helpers -----------------------------
def _leaky_relu(x):
    return jnp.where(x > 0, x, LEAKY_SLOPE * x)


def _sigmoid(x):
    # exp + approx reciprocal both land on the EUP slot; no VALU divide.
    # TODO(synk): approx reciprocal is ~1e-3-level off torch.sigmoid; use approx=False for tight parity.
    return pl.reciprocal(1.0 + jnp.exp(-x), approx=True)


def _bn_train(x, gamma, beta):
    # nn.BatchNorm2d in train mode: per-channel batch stats over all rows.
    # Variance as E[x^2] - mean^2 so the two sublane reductions can overlap in the XLU.
    # TODO(synk): eval-mode running statistics are not modeled (module default is train()).
    mean = jnp.mean(x, axis=0, keepdims=True)
    mean_sq = jnp.mean(x * x, axis=0, keepdims=True)
    var = mean_sq - mean * mean
    return (x - mean) * jax.lax.rsqrt(var + BN_EPS) * gamma + beta


# --------------------------------- fused kernel ------------------------------
def fused_autoencoder_kernel(
        x_ref, eps_ref, vecs_ref,
        ew1_ref, ew2_ref, nw_ref, mvw_ref, dw1_ref, dw2_ref, tw1_ref, tw2_ref,
        out_ref, mv_ref):
    R, F = x_ref.shape                 # R = batch * samples, F = features
    B, two_lat = mv_ref.shape
    latent = two_lat // 2
    S = R // B
    Cp = ew1_ref.shape[1]              # padded channel dim (128)
    H = nw_ref.shape[1]                # padded hidden dim (256)
    SCp = S * Cp

    def vec(row, width):
        return vecs_ref[row:row + 1, 0:width]

    # ----- encoder conv stage: Conv2d(1,C,(1,F)) -> BN -> LReLU -> Conv2d(C,C,(1,1)) -> BN -> LReLU
    h = jnp.dot(x_ref[...], ew1_ref[...], preferred_element_type=jnp.float32) + vec(_ENC_B1, Cp)
    h = _leaky_relu(_bn_train(h, vec(_ENC_G1, Cp), vec(_ENC_BE1, Cp)))
    h = jnp.dot(h, ew2_ref[...], preferred_element_type=jnp.float32) + vec(_ENC_B2, Cp)
    h = _leaky_relu(_bn_train(h, vec(_ENC_G2, Cp), vec(_ENC_BE2, Cp)))

    # torch (B,C,S,1).flatten(1) is folded into nw_ref's row permutation; here a plain
    # row-major reshape (B*S, Cp) -> (B, S*Cp) suffices.
    flat = h.reshape(B, SCp)

    # ----- encoder dense stage: Linear -> Sigmoid, then fused mu|var head
    hd = _sigmoid(jnp.dot(flat.astype(nw_ref.dtype), nw_ref[...],
                          preferred_element_type=jnp.float32) + vec(_NET_B, H))
    mv = jnp.dot(hd, mvw_ref[...], preferred_element_type=jnp.float32) + vec(_MV_B, two_lat)
    mv_ref[...] = mv                   # (B, 2*latent) slab: [mu | var], split in wrapper

    mu = mv[:, 0:latent]
    var = mv[:, latent:two_lat]

    # ----- reparameterization + decoder dense stage
    lat = eps_ref[...] * jnp.exp(0.5 * var) + mu
    hdd = _sigmoid(jnp.dot(lat, dw1_ref[...], preferred_element_type=jnp.float32)
                   + vec(_DEC_B1, H))
    z = jnp.dot(hdd.astype(dw2_ref.dtype), dw2_ref[...],
                preferred_element_type=jnp.float32) + vec(_DEC_B2, SCp)     # (B, S*Cp)

    # torch reshape(B, C, S, 1) is folded into dw2_ref's column permutation; row-major reshape back.
    zr = z.reshape(R, Cp)

    # ----- decoder conv stage: ConvT(C,C,(1,1)) -> BN -> LReLU -> ConvT(C,1,(1,F))
    h3 = jnp.dot(zr, tw1_ref[...], preferred_element_type=jnp.float32) + vec(_TCV_B1, Cp)
    h3 = _leaky_relu(_bn_train(h3, vec(_TCV_G1, Cp), vec(_TCV_BE1, Cp)))
    out_ref[...] = (jnp.dot(h3, tw2_ref[...], preferred_element_type=jnp.float32)
                    + vec(_TCV_B2, F))


# ------------------------------ pallas plumbing -------------------------------
def _fullspec(shape):
    n = len(shape)
    return pl.BlockSpec(shape, lambda i, n=n: (0,) * n)


# ------------------------------ parameters -----------------------------------
def init_params(key, samples, features, latent):
    """Logical parameters in torch-equivalent (already matmul-transposed) layouts."""
    C = CONV_SIZE
    in_linear = samples * C
    hidden = int(in_linear - 3 * (in_linear - latent) / 4)   # encoder hidden_2 == decoder hidden_1

    keys = jax.random.split(key, 32)
    k = iter(keys)

    def w(shape, scale=0.05):
        return (scale * jax.random.normal(next(k), shape)).astype(jnp.float32)

    return {
        # encoder conv stage
        "enc_w1": w((features, C)), "enc_b1": w((1, C)),
        "enc_g1": 1.0 + w((1, C)), "enc_be1": w((1, C)),
        "enc_w2": w((C, C)), "enc_b2": w((1, C)),
        "enc_g2": 1.0 + w((1, C)), "enc_be2": w((1, C)),
        # encoder dense stage
        "net_w": w((in_linear, hidden)), "net_b": w((1, hidden)),
        "mu_w": w((hidden, latent)), "mu_b": w((1, latent)),
        "var_w": w((hidden, latent)), "var_b": w((1, latent)),
        # decoder dense stage
        "dec_w1": w((latent, hidden)), "dec_b1": w((1, hidden)),
        "dec_w2": w((hidden, in_linear)), "dec_b2": w((1, in_linear)),
        # decoder conv stage
        "tcv_w1": w((C, C)), "tcv_b1": w((1, C)),
        "tcv_g1": 1.0 + w((1, C)), "tcv_be1": w((1, C)),
        "tcv_w2": w((C, features)), "tcv_b2": w((1, 1)),
    }


def prepare_params(raw, samples, features, latent):
    """One-time padding (C->128, hidden->256), permutation folding, head fusion and bias packing."""
    C, Cp, S, F = CONV_SIZE, C_PAD, samples, features
    pad_c = Cp - C
    hidden = raw["net_w"].shape[1]
    hp = ((hidden + 127) // 128) * 128
    pad_h = hp - hidden
    W = S * Cp                              # width of the packed vector slab

    def row(v):                             # pad a 1-D vector to the slab width
        v = jnp.asarray(v, jnp.float32).reshape(-1)
        return jnp.pad(v, (0, W - v.shape[0]))

    def cpad(v):                            # (1, C) -> (Cp,), padded channels exactly zero
        return jnp.pad(jnp.asarray(v, jnp.float32).reshape(-1), (0, pad_c))

    # encoder flatten: torch row m = c*S + s of net_w -> row s*Cp + c of the padded weight
    net_w = raw["net_w"].reshape(C, S, hidden).transpose(1, 0, 2)        # (S, C, hidden)
    net_w = jnp.pad(net_w, ((0, 0), (0, pad_c), (0, pad_h)))             # (S, Cp, hp)
    net_w = net_w.reshape(S * Cp, hp).astype(jnp.bfloat16)

    # fused mu|var head; padded hidden rows are exactly zero (keeps sigmoid(0)=0.5 lanes inert)
    mv_w = jnp.concatenate([jnp.pad(raw["mu_w"], ((0, pad_h), (0, 0))),
                            jnp.pad(raw["var_w"], ((0, pad_h), (0, 0)))], axis=1)

    dec_w1 = jnp.pad(raw["dec_w1"], ((0, 0), (0, pad_h)))                # (latent, hp)

    # decoder reshape: torch column m = c*S + s of dec_w2 -> column s*Cp + c; padded hidden rows zero
    dec_w2 = raw["dec_w2"].reshape(hidden, C, S).transpose(0, 2, 1)      # (hidden, S, C)
    dec_w2 = jnp.pad(dec_w2, ((0, pad_h), (0, 0), (0, pad_c)))           # (hp, S, Cp)
    dec_w2 = dec_w2.reshape(hp, S * Cp).astype(jnp.bfloat16)

    dec_b2 = raw["dec_b2"].reshape(C, S).transpose(1, 0)                 # (S, C)
    dec_b2 = jnp.pad(dec_b2, ((0, 0), (0, pad_c))).reshape(S * Cp)

    mv_b = jnp.concatenate([raw["mu_b"].reshape(-1), raw["var_b"].reshape(-1)])

    vecs = jnp.stack([
        row(cpad(raw["enc_b1"])), row(cpad(raw["enc_g1"])), row(cpad(raw["enc_be1"])),
        row(cpad(raw["enc_b2"])), row(cpad(raw["enc_g2"])), row(cpad(raw["enc_be2"])),
        row(cpad(raw["tcv_b1"])), row(cpad(raw["tcv_g1"])), row(cpad(raw["tcv_be1"])),
        row(jnp.broadcast_to(raw["tcv_b2"].reshape(()), (F,))),          # scalar ConvT(C,1) bias
        row(jnp.pad(raw["net_b"].reshape(-1), (0, pad_h))),
        row(mv_b),
        row(jnp.pad(raw["dec_b1"].reshape(-1), (0, pad_h))),
        row(dec_b2),
    ], axis=0).astype(jnp.float32)
    assert vecs.shape == (_N_VEC_ROWS, W)

    return {
        "vecs": vecs,
        "enc_w1": jnp.pad(raw["enc_w1"], ((0, 0), (0, pad_c))),          # (F, Cp) f32
        "enc_w2": jnp.pad(raw["enc_w2"], ((0, pad_c), (0, pad_c))),      # (Cp, Cp) f32
        "net_w": net_w,                                                  # (S*Cp, hp) bf16
        "mv_w": mv_w,                                                    # (hp, 2*latent) f32
        "dec_w1": dec_w1,                                                # (latent, hp) f32
        "dec_w2": dec_w2,                                                # (hp, S*Cp) bf16
        "tcv_w1": jnp.pad(raw["tcv_w1"], ((0, pad_c), (0, pad_c))),      # (Cp, Cp) f32
        "tcv_w2": jnp.pad(raw["tcv_w2"], ((0, pad_c), (0, 0))),          # (Cp, F) f32
    }


# -------------------------------- forward ------------------------------------
@functools.partial(jax.jit, static_argnames=("samples", "features", "latent"))
def autoencoder_forward(prep, x, eps, *, samples, features, latent):
    B = x.shape[0]
    S, F, Cp, L = samples, features, C_PAD, latent
    R = B * S
    H = prep["net_w"].shape[1]

    x2 = x.reshape(R, F).astype(jnp.float32)
    inputs = [
        x2, eps.astype(jnp.float32), prep["vecs"],
        prep["enc_w1"], prep["enc_w2"], prep["net_w"], prep["mv_w"],
        prep["dec_w1"], prep["dec_w2"], prep["tcv_w1"], prep["tcv_w2"],
    ]
    out_shapes = [
        jax.ShapeDtypeStruct((R, F), jnp.float32),        # reconstruction rows (b*S + s, feature)
        jax.ShapeDtypeStruct((B, 2 * L), jnp.float32),    # fused [mu | var] slab
    ]

    flops = 2 * (R * F * Cp + R * Cp * Cp                 # encoder conv stage
                 + B * (S * Cp) * H + B * H * (2 * L)     # encoder dense + fused heads
                 + B * L * H + B * H * (S * Cp)           # decoder dense
                 + R * Cp * Cp + R * Cp * F)              # decoder conv stage
    transcendentals = B * (2 * H + 3 * L)
    bytes_accessed = int(sum(a.size * a.dtype.itemsize for a in inputs)
                         + 4 * (R * F + B * 2 * L))

    fn = pl.pallas_call(
        fused_autoencoder_kernel,
        grid=(1,),
        in_specs=[_fullspec(a.shape) for a in inputs],
        out_specs=[_fullspec(o.shape) for o in out_shapes],
        out_shape=out_shapes,
        compiler_params=pltpu.CompilerParams(
            dimension_semantics=("arbitrary",),
            vmem_limit_bytes=8 * 1024 * 1024,
        ),
        cost_estimate=pl.CostEstimate(flops=flops,
                                      transcendentals=transcendentals,
                                      bytes_accessed=bytes_accessed),
    )
    out_rows, mv = fn(*inputs)
    out = out_rows.reshape(B, S, F)        # torch output (B, 1, S, F).squeeze() -> (B, S, F)
    lat_mu = mv[:, :L]
    lat_var = mv[:, L:]
    return out, lat_mu, lat_var


# ---------------------------------- main --------------------------------------
if __name__ == "__main__":
    B, SAMPLES, FEATURES, LATENT = 2, 8, 16, 32

    root = jax.random.PRNGKey(0)
    k_params, k_x, k_eps = jax.random.split(root, 3)

    raw_params = init_params(k_params, SAMPLES, FEATURES, LATENT)
    prep_params = prepare_params(raw_params, SAMPLES, FEATURES, LATENT)

    x = jax.random.normal(k_x, (B, SAMPLES, FEATURES), dtype=jnp.float32)
    # torch draws eps = randn_like(std) inside forward(); drawn deterministically here and passed in.
    eps = jax.random.normal(k_eps, (B, LATENT), dtype=jnp.float32)

    out, lat_mu, lat_var = autoencoder_forward(
        prep_params, x, eps, samples=SAMPLES, features=FEATURES, latent=LATENT)
    jax.block_until_ready((out, lat_mu, lat_var))

    assert out.shape == (B, SAMPLES, FEATURES)
    assert lat_mu.shape == (B, LATENT) and lat_var.shape == (B, LATENT)
    assert bool(jnp.all(jnp.isfinite(out)))
    assert bool(jnp.all(jnp.isfinite(lat_mu))) and bool(jnp.all(jnp.isfinite(lat_var)))
    print("KERNEL_OK")
</pallas_src>

<mosaic_0001>
module attributes {stable_mosaic.version = 11 : i64} {
  func.func @fused_autoencoder_kernel(%arg0: i32, %arg1: memref<16x16xf32, #tpu.memory_space<vmem>>, %arg2: memref<2x32xf32, #tpu.memory_space<vmem>>, %arg3: memref<14x1024xf32, #tpu.memory_space<vmem>>, %arg4: memref<16x128xf32, #tpu.memory_space<vmem>>, %arg5: memref<128x128xf32, #tpu.memory_space<vmem>>, %arg6: memref<1024x256xbf16, #tpu.memory_space<vmem>>, %arg7: memref<256x64xf32, #tpu.memory_space<vmem>>, %arg8: memref<32x256xf32, #tpu.memory_space<vmem>>, %arg9: memref<256x1024xbf16, #tpu.memory_space<vmem>>, %arg10: memref<128x128xf32, #tpu.memory_space<vmem>>, %arg11: memref<128x16xf32, #tpu.memory_space<vmem>>, %arg12: memref<16x16xf32, #tpu.memory_space<vmem>>, %arg13: memref<2x64xf32, #tpu.memory_space<vmem>>) attributes {dimension_semantics = [#tpu.dimension_semantics<arbitrary>], iteration_bounds = array<i64: 1>, scalar_prefetch = 0 : i64, scratch_operands = 0 : i64, tpu.core_type = #tpu.core_type<tc>, window_params = [{pipeline_mode = #tpu.pipeline_mode<synchronous>, transform_indices = @transform_0, window_bounds = array<i64: 16, 16>}, {pipeline_mode = #tpu.pipeline_mode<synchronous>, transform_indices = @transform_1, window_bounds = array<i64: 2, 32>}, {pipeline_mode = #tpu.pipeline_mode<synchronous>, transform_indices = @transform_2, window_bounds = array<i64: 14, 1024>}, {pipeline_mode = #tpu.pipeline_mode<synchronous>, transform_indices = @transform_3, window_bounds = array<i64: 16, 128>}, {pipeline_mode = #tpu.pipeline_mode<synchronous>, transform_indices = @transform_4, window_bounds = array<i64: 128, 128>}, {pipeline_mode = #tpu.pipeline_mode<synchronous>, transform_indices = @transform_5, window_bounds = array<i64: 1024, 256>}, {pipeline_mode = #tpu.pipeline_mode<synchronous>, transform_indices = @transform_6, window_bounds = array<i64: 256, 64>}, {pipeline_mode = #tpu.pipeline_mode<synchronous>, transform_indices = @transform_7, window_bounds = array<i64: 32, 256>}, {pipeline_mode = #tpu.pipeline_mode<synchronous>, transform_indices = @transform_8, window_bounds = array<i64: 256, 1024>}, {pipeline_mode = #tpu.pipeline_mode<synchronous>, transform_indices = @transform_9, window_bounds = array<i64: 128, 128>}, {pipeline_mode = #tpu.pipeline_mode<synchronous>, transform_indices = @transform_10, window_bounds = array<i64: 128, 16>}, {pipeline_mode = #tpu.pipeline_mode<synchronous>, transform_indices = @transform_11, window_bounds = array<i64: 16, 16>}, {pipeline_mode = #tpu.pipeline_mode<synchronous>, transform_indices = @transform_12, window_bounds = array<i64: 2, 64>}]} {
    %c0 = arith.constant 0 : index
    %c0_0 = arith.constant 0 : index
    %0 = vector.load %arg1[%c0, %c0_0] : memref<16x16xf32, #tpu.memory_space<vmem>>, vector<16x16xf32>
    %c0_1 = arith.constant 0 : index
    %c0_2 = arith.constant 0 : index
    %1 = vector.load %arg4[%c0_1, %c0_2] : memref<16x128xf32, #tpu.memory_space<vmem>>, vector<16x128xf32>
    %cst = arith.constant dense<0.000000e+00> : vector<16x128xf32>
    %2 = tpu.matmul %0, %1, %cst {dimension_numbers = #tpu.dot_dimension_numbers<[1], [0], [0], [1], [0, 0, 1, 1], [], []>} : vector<16x16xf32>, vector<16x128xf32>, vector<16x128xf32> -> vector<16x128xf32>
    %c0_3 = arith.constant 0 : index
    %c0_4 = arith.constant 0 : index
    %3 = vector.load %arg3[%c0_3, %c0_4] : memref<14x1024xf32, #tpu.memory_space<vmem>>, vector<1x128xf32>
    %4 = vector.broadcast %3 : vector<1x128xf32> to vector<16x128xf32>
    %5 = arith.addf %2, %4 : vector<16x128xf32>
    %c1 = arith.constant 1 : index
    %c0_5 = arith.constant 0 : index
    %6 = vector.load %arg3[%c1, %c0_5] : memref<14x1024xf32, #tpu.memory_space<vmem>>, vector<1x128xf32>
    %c2 = arith.constant 2 : index
    %c0_6 = arith.constant 0 : index
    %7 = vector.load %arg3[%c2, %c0_6] : memref<14x1024xf32, #tpu.memory_space<vmem>>, vector<1x128xf32>
    %cst_7 = arith.constant dense<0.000000e+00> : vector<128xf32>
    %8 = vector.multi_reduction <add>, %5, %cst_7 [0] : vector<16x128xf32> to vector<128xf32>
    %9 = vector.shape_cast %8 : vector<128xf32> to vector<1x128xf32>
    %cst_8 = arith.constant 1.600000e+01 : f32
    %10 = vector.broadcast %cst_8 : f32 to vector<1x128xf32>
    %11 = arith.divf %9, %10 : vector<1x128xf32>
    %12 = arith.mulf %5, %5 : vector<16x128xf32>
    %cst_9 = arith.constant dense<0.000000e+00> : vector<128xf32>
    %13 = vector.multi_reduction <add>, %12, %cst_9 [0] : vector<16x128xf32> to vector<128xf32>
    %14 = vector.shape_cast %13 : vector<128xf32> to vector<1x128xf32>
    %cst_10 = arith.constant 1.600000e+01 : f32
    %15 = vector.broadcast %cst_10 : f32 to vector<1x128xf32>
    %16 = arith.divf %14, %15 : vector<1x128xf32>
    %17 = arith.mulf %11, %11 : vector<1x128xf32>
    %18 = arith.subf %16, %17 : vector<1x128xf32>
    %19 = vector.broadcast %11 : vector<1x128xf32> to vector<16x128xf32>
    %20 = arith.subf %5, %19 : vector<16x128xf32>
    %cst_11 = arith.constant 9.99999974E-6 : f32
    %21 = vector.broadcast %cst_11 : f32 to vector<1x128xf32>
    %22 = arith.addf %18, %21 : vector<1x128xf32>
    %23 = math.rsqrt %22 : vector<1x128xf32>
    %24 = vector.broadcast %23 : vector<1x128xf32> to vector<16x128xf32>
    %25 = arith.mulf %20, %24 : vector<16x128xf32>
    %26 = vector.broadcast %6 : vector<1x128xf32> to vector<16x128xf32>
    %27 = arith.mulf %25, %26 : vector<16x128xf32>
    %28 = vector.broadcast %7 : vector<1x128xf32> to vector<16x128xf32>
    %29 = arith.addf %27, %28 : vector<16x128xf32>
    %cst_12 = arith.constant 0.000000e+00 : f32
    %30 = vector.broadcast %cst_12 : f32 to vector<16x128xf32>
    %31 = arith.cmpf ogt, %29, %30 : vector<16x128xf32>
    %cst_13 = arith.constant 2.000000e-01 : f32
    %32 = vector.broadcast %cst_13 : f32 to vector<16x128xf32>
    %33 = arith.mulf %32, %29 : vector<16x128xf32>
    %34 = arith.select %31, %29, %33 : vector<16x128xi1>, vector<16x128xf32>
    %c0_14 = arith.constant 0 : index
    %c0_15 = arith.constant 0 : index
    %35 = vector.load %arg5[%c0_14, %c0_15] : memref<128x128xf32, #tpu.memory_space<vmem>>, vector<128x128xf32>
    %cst_16 = arith.constant dense<0.000000e+00> : vector<16x128xf32>
    %36 = tpu.matmul %34, %35, %cst_16 {dimension_numbers = #tpu.dot_dimension_numbers<[1], [0], [0], [1], [0, 0, 1, 1], [], []>} : vector<16x128xf32>, vector<128x128xf32>, vector<16x128xf32> -> vector<16x128xf32>
    %c3 = arith.constant 3 : index
    %c0_17 = arith.constant 0 : index
    %37 = vector.load %arg3[%c3, %c0_17] : memref<14x1024xf32, #tpu.memory_space<vmem>>, vector<1x128xf32>
    %38 = vector.broadcast %37 : vector<1x128xf32> to vector<16x128xf32>
    %39 = arith.addf %36, %38 : vector<16x128xf32>
    %c4 = arith.constant 4 : index
    %c0_18 = arith.constant 0 : index
    %40 = vector.load %arg3[%c4, %c0_18] : memref<14x1024xf32, #tpu.memory_space<vmem>>, vector<1x128xf32>
    %c5 = arith.constant 5 : index
    %c0_19 = arith.constant 0 : index
    %41 = vector.load %arg3[%c5, %c0_19] : memref<14x1024xf32, #tpu.memory_space<vmem>>, vector<1x128xf32>
    %cst_20 = arith.constant dense<0.000000e+00> : vector<128xf32>
    %42 = vector.multi_reduction <add>, %39, %cst_20 [0] : vector<16x128xf32> to vector<128xf32>
    %43 = vector.shape_cast %42 : vector<128xf32> to vector<1x128xf32>
    %cst_21 = arith.constant 1.600000e+01 : f32
    %44 = vector.broadcast %cst_21 : f32 to vector<1x128xf32>
    %45 = arith.divf %43, %44 : vector<1x128xf32>
    %46 = arith.mulf %39, %39 : vector<16x128xf32>
    %cst_22 = arith.constant dense<0.000000e+00> : vector<128xf32>
    %47 = vector.multi_reduction <add>, %46, %cst_22 [0] : vector<16x128xf32> to vector<128xf32>
    %48 = vector.shape_cast %47 : vector<128xf32> to vector<1x128xf32>
    %cst_23 = arith.constant 1.600000e+01 : f32
    %49 = vector.broadcast %cst_23 : f32 to vector<1x128xf32>
    %50 = arith.divf %48, %49 : vector<1x128xf32>
    %51 = arith.mulf %45, %45 : vector<1x128xf32>
    %52 = arith.subf %50, %51 : vector<1x128xf32>
    %53 = vector.broadcast %45 : vector<1x128xf32> to vector<16x128xf32>
    %54 = arith.subf %39, %53 : vector<16x128xf32>
    %cst_24 = arith.constant 9.99999974E-6 : f32
    %55 = vector.broadcast %cst_24 : f32 to vector<1x128xf32>
    %56 = arith.addf %52, %55 : vector<1x128xf32>
    %57 = math.rsqrt %56 : vector<1x128xf32>
    %58 = vector.broadcast %57 : vector<1x128xf32> to vector<16x128xf32>
    %59 = arith.mulf %54, %58 : vector<16x128xf32>
    %60 = vector.broadcast %40 : vector<1x128xf32> to vector<16x128xf32>
    %61 = arith.mulf %59, %60 : vector<16x128xf32>
    %62 = vector.broadcast %41 : vector<1x128xf32> to vector<16x128xf32>
    %63 = arith.addf %61, %62 : vector<16x128xf32>
    %cst_25 = arith.constant 0.000000e+00 : f32
    %64 = vector.broadcast %cst_25 : f32 to vector<16x128xf32>
    %65 = arith.cmpf ogt, %63, %64 : vector<16x128xf32>
    %cst_26 = arith.constant 2.000000e-01 : f32
    %66 = vector.broadcast %cst_26 : f32 to vector<16x128xf32>
    %67 = arith.mulf %66, %63 : vector<16x128xf32>
    %68 = arith.select %65, %63, %67 : vector<16x128xi1>, vector<16x128xf32>
    %69 = vector.shape_cast %68 : vector<16x128xf32> to vector<2x1024xf32>
    %70 = arith.truncf %69 : vector<2x1024xf32> to vector<2x1024xbf16>
    %c0_27 = arith.constant 0 : index
    %c0_28 = arith.constant 0 : index
    %71 = vector.load %arg6[%c0_27, %c0_28] : memref<1024x256xbf16, #tpu.memory_space<vmem>>, vector<1024x256xbf16>
    %cst_29 = arith.constant dense<0.000000e+00> : vector<2x256xf32>
    %72 = tpu.matmul %70, %71, %cst_29 {dimension_numbers = #tpu.dot_dimension_numbers<[1], [0], [0], [1], [0, 0, 1, 1], [], []>} : vector<2x1024xbf16>, vector<1024x256xbf16>, vector<2x256xf32> -> vector<2x256xf32>
    %c10 = arith.constant 10 : index
    %c0_30 = arith.constant 0 : index
    %73 = vector.load %arg3[%c10, %c0_30] : memref<14x1024xf32, #tpu.memory_space<vmem>>, vector<1x256xf32>
    %74 = vector.broadcast %73 : vector<1x256xf32> to vector<2x256xf32>
    %75 = arith.addf %72, %74 : vector<2x256xf32>
    %cst_31 = arith.constant 0.000000e+00 : f32
    %76 = vector.broadcast %cst_31 : f32 to vector<2x256xf32>
    %77 = arith.subf %76, %75 : vector<2x256xf32>
    %78 = math.exp %77 : vector<2x256xf32>
    %cst_32 = arith.constant 1.000000e+00 : f32
    %79 = vector.broadcast %cst_32 : f32 to vector<2x256xf32>
    %80 = arith.addf %79, %78 : vector<2x256xf32>
    %81 = tpu.reciprocal %80 {approx = true} : vector<2x256xf32> -> vector<2x256xf32>
    %c0_33 = arith.constant 0 : index
    %c0_34 = arith.constant 0 : index
    %82 = vector.load %arg7[%c0_33, %c0_34] : memref<256x64xf32, #tpu.memory_space<vmem>>, vector<256x64xf32>
    %cst_35 = arith.constant dense<0.000000e+00> : vector<2x64xf32>
    %83 = tpu.matmul %81, %82, %cst_35 {dimension_numbers = #tpu.dot_dimension_numbers<[1], [0], [0], [1], [0, 0, 1, 1], [], []>} : vector<2x256xf32>, vector<256x64xf32>, vector<2x64xf32> -> vector<2x64xf32>
    %c11 = arith.constant 11 : index
    %c0_36 = arith.constant 0 : index
    %84 = vector.load %arg3[%c11, %c0_36] : memref<14x1024xf32, #tpu.memory_space<vmem>>, vector<1x64xf32>
    %85 = vector.broadcast %84 : vector<1x64xf32> to vector<2x64xf32>
    %86 = arith.addf %83, %85 : vector<2x64xf32>
    %c0_37 = arith.constant 0 : index
    %c0_38 = arith.constant 0 : index
    %87 = vector.load %arg13[%c0_37, %c0_38] : memref<2x64xf32, #tpu.memory_space<vmem>>, vector<2x64xf32>
    tpu.vector_store %arg13[%c0_37, %c0_38], %86 {strides = array<i32>} : memref<2x64xf32, #tpu.memory_space<vmem>>, vector<2x64xf32>,
    %88 = vector.extract_strided_slice %86 {offsets = [0, 0], sizes = [2, 32], strides = [1, 1]} : vector<2x64xf32> to vector<2x32xf32>
    %89 = vector.extract_strided_slice %86 {offsets = [0, 32], sizes = [2, 32], strides = [1, 1]} : vector<2x64xf32> to vector<2x32xf32>
    %c0_39 = arith.constant 0 : index
    %c0_40 = arith.constant 0 : index
    %90 = vector.load %arg2[%c0_39, %c0_40] : memref<2x32xf32, #tpu.memory_space<vmem>>, vector<2x32xf32>
    %cst_41 = arith.constant 5.000000e-01 : f32
    %91 = vector.broadcast %cst_41 : f32 to vector<2x32xf32>
    %92 = arith.mulf %91, %89 : vector<2x32xf32>
    %93 = math.exp %92 : vector<2x32xf32>
    %94 = arith.mulf %90, %93 : vector<2x32xf32>
    %95 = arith.addf %94, %88 : vector<2x32xf32>
    %c0_42 = arith.constant 0 : index
    %c0_43 = arith.constant 0 : index
    %96 = vector.load %arg8[%c0_42, %c0_43] : memref<32x256xf32, #tpu.memory_space<vmem>>, vector<32x256xf32>
    %cst_44 = arith.constant dense<0.000000e+00> : vector<2x256xf32>
    %97 = tpu.matmul %95, %96, %cst_44 {dimension_numbers = #tpu.dot_dimension_numbers<[1], [0], [0], [1], [0, 0, 1, 1], [], []>} : vector<2x32xf32>, vector<32x256xf32>, vector<2x256xf32> -> vector<2x256xf32>
    %c12 = arith.constant 12 : index
    %c0_45 = arith.constant 0 : index
    %98 = vector.load %arg3[%c12, %c0_45] : memref<14x1024xf32, #tpu.memory_space<vmem>>, vector<1x256xf32>
    %99 = vector.broadcast %98 : vector<1x256xf32> to vector<2x256xf32>
    %100 = arith.addf %97, %99 : vector<2x256xf32>
    %cst_46 = arith.constant 0.000000e+00 : f32
    %101 = vector.broadcast %cst_46 : f32 to vector<2x256xf32>
    %102 = arith.subf %101, %100 : vector<2x256xf32>
    %103 = math.exp %102 : vector<2x256xf32>
    %cst_47 = arith.constant 1.000000e+00 : f32
    %104 = vector.broadcast %cst_47 : f32 to vector<2x256xf32>
    %105 = arith.addf %104, %103 : vector<2x256xf32>
    %106 = tpu.reciprocal %105 {approx = true} : vector<2x256xf32> -> vector<2x256xf32>
    %107 = arith.truncf %106 : vector<2x256xf32> to vector<2x256xbf16>
    %c0_48 = arith.constant 0 : index
    %c0_49 = arith.constant 0 : index
    %108 = vector.load %arg9[%c0_48, %c0_49] : memref<256x1024xbf16, #tpu.memory_space<vmem>>, vector<256x1024xbf16>
    %cst_50 = arith.constant dense<0.000000e+00> : vector<2x1024xf32>
    %109 = tpu.matmul %107, %108, %cst_50 {dimension_numbers = #tpu.dot_dimension_numbers<[1], [0], [0], [1], [0, 0, 1, 1], [], []>} : vector<2x256xbf16>, vector<256x1024xbf16>, vector<2x1024xf32> -> vector<2x1024xf32>
    %c13 = arith.constant 13 : index
    %c0_51 = arith.constant 0 : index
    %110 = vector.load %arg3[%c13, %c0_51] : memref<14x1024xf32, #tpu.memory_space<vmem>>, vector<1x1024xf32>
    %111 = vector.broadcast %110 : vector<1x1024xf32> to vector<2x1024xf32>
    %112 = arith.addf %109, %111 : vector<2x1024xf32>
    %113 = vector.shape_cast %112 : vector<2x1024xf32> to vector<16x128xf32>
    %c0_52 = arith.constant 0 : index
    %c0_53 = arith.constant 0 : index
    %114 = vector.load %arg10[%c0_52, %c0_53] : memref<128x128xf32, #tpu.memory_space<vmem>>, vector<128x128xf32>
    %cst_54 = arith.constant dense<0.000000e+00> : vector<16x128xf32>
    %115 = tpu.matmul %113, %114, %cst_54 {dimension_numbers = #tpu.dot_dimension_numbers<[1], [0], [0], [1], [0, 0, 1, 1], [], []>} : vector<16x128xf32>, vector<128x128xf32>, vector<16x128xf32> -> vector<16x128xf32>
    %c6 = arith.constant 6 : index
    %c0_55 = arith.constant 0 : index
    %116 = vector.load %arg3[%c6, %c0_55] : memref<14x1024xf32, #tpu.memory_space<vmem>>, vector<1x128xf32>
    %117 = vector.broadcast %116 : vector<1x128xf32> to vector<16x128xf32>
    %118 = arith.addf %115, %117 : vector<16x128xf32>
    %c7 = arith.constant 7 : index
    %c0_56 = arith.constant 0 : index
    %119 = vector.load %arg3[%c7, %c0_56] : memref<14x1024xf32, #tpu.memory_space<vmem>>, vector<1x128xf32>
    %c8 = arith.constant 8 : index
    %c0_57 = arith.constant 0 : index
    %120 = vector.load %arg3[%c8, %c0_57] : memref<14x1024xf32, #tpu.memory_space<vmem>>, vector<1x128xf32>
    %cst_58 = arith.constant dense<0.000000e+00> : vector<128xf32>
    %121 = vector.multi_reduction <add>, %118, %cst_58 [0] : vector<16x128xf32> to vector<128xf32>
    %122 = vector.shape_cast %121 : vector<128xf32> to vector<1x128xf32>
    %cst_59 = arith.constant 1.600000e+01 : f32
    %123 = vector.broadcast %cst_59 : f32 to vector<1x128xf32>
    %124 = arith.divf %122, %123 : vector<1x128xf32>
    %125 = arith.mulf %118, %118 : vector<16x128xf32>
    %cst_60 = arith.constant dense<0.000000e+00> : vector<128xf32>
    %126 = vector.multi_reduction <add>, %125, %cst_60 [0] : vector<16x128xf32> to vector<128xf32>
    %127 = vector.shape_cast %126 : vector<128xf32> to vector<1x128xf32>
    %cst_61 = arith.constant 1.600000e+01 : f32
    %128 = vector.broadcast %cst_61 : f32 to vector<1x128xf32>
    %129 = arith.divf %127, %128 : vector<1x128xf32>
    %130 = arith.mulf %124, %124 : vector<1x128xf32>
    %131 = arith.subf %129, %130 : vector<1x128xf32>
    %132 = vector.broadcast %124 : vector<1x128xf32> to vector<16x128xf32>
    %133 = arith.subf %118, %132 : vector<16x128xf32>
    %cst_62 = arith.constant 9.99999974E-6 : f32
    %134 = vector.broadcast %cst_62 : f32 to vector<1x128xf32>
    %135 = arith.addf %131, %134 : vector<1x128xf32>
    %136 = math.rsqrt %135 : vector<1x128xf32>
    %137 = vector.broadcast %136 : vector<1x128xf32> to vector<16x128xf32>
    %138 = arith.mulf %133, %137 : vector<16x128xf32>
    %139 = vector.broadcast %119 : vector<1x128xf32> to vector<16x128xf32>
    %140 = arith.mulf %138, %139 : vector<16x128xf32>
    %141 = vector.broadcast %120 : vector<1x128xf32> to vector<16x128xf32>
    %142 = arith.addf %140, %141 : vector<16x128xf32>
    %cst_63 = arith.constant 0.000000e+00 : f32
    %143 = vector.broadcast %cst_63 : f32 to vector<16x128xf32>
    %144 = arith.cmpf ogt, %142, %143 : vector<16x128xf32>
    %cst_64 = arith.constant 2.000000e-01 : f32
    %145 = vector.broadcast %cst_64 : f32 to vector<16x128xf32>
    %146 = arith.mulf %145, %142 : vector<16x128xf32>
    %147 = arith.select %144, %142, %146 : vector<16x128xi1>, vector<16x128xf32>
    %c0_65 = arith.constant 0 : index
    %c0_66 = arith.constant 0 : index
    %148 = vector.load %arg11[%c0_65, %c0_66] : memref<128x16xf32, #tpu.memory_space<vmem>>, vector<128x16xf32>
    %cst_67 = arith.constant dense<0.000000e+00> : vector<16x16xf32>
    %149 = tpu.matmul %147, %148, %cst_67 {dimension_numbers = #tpu.dot_dimension_numbers<[1], [0], [0], [1], [0, 0, 1, 1], [], []>} : vector<16x128xf32>, vector<128x16xf32>, vector<16x16xf32> -> vector<16x16xf32>
    %c9 = arith.constant 9 : index
    %c0_68 = arith.constant 0 : index
    %150 = vector.load %arg3[%c9, %c0_68] : memref<14x1024xf32, #tpu.memory_space<vmem>>, vector<1x16xf32>
    %151 = vector.broadcast %150 : vector<1x16xf32> to vector<16x16xf32>
    %152 = arith.addf %149, %151 : vector<16x16xf32>
    %c0_69 = arith.constant 0 : index
    %c0_70 = arith.constant 0 : index
    %153 = vector.load %arg12[%c0_69, %c0_70] : memref<16x16xf32, #tpu.memory_space<vmem>>, vector<16x16xf32>
    tpu.vector_store %arg12[%c0_69, %c0_70], %152 {strides = array<i32>} : memref<16x16xf32, #tpu.memory_space<vmem>>, vector<16x16xf32>,
    return
  }
  func.func @transform_0(%arg0: i32) -> (i32, i32) {
    %c0_i32 = arith.constant 0 : i32
    %c0_i32_0 = arith.constant 0 : i32
    %c0_i32_1 = arith.constant 0 : i32
    return %c0_i32, %c0_i32_0 : i32, i32
  }
  func.func @transform_1(%arg0: i32) -> (i32, i32) {
    %c0_i32 = arith.constant 0 : i32
    %c0_i32_0 = arith.constant 0 : i32
    %c0_i32_1 = arith.constant 0 : i32
    return %c0_i32, %c0_i32_0 : i32, i32
  }
  func.func @transform_2(%arg0: i32) -> (i32, i32) {
    %c0_i32 = arith.constant 0 : i32
    %c0_i32_0 = arith.constant 0 : i32
    %c0_i32_1 = arith.constant 0 : i32
    return %c0_i32, %c0_i32_0 : i32, i32
  }
  func.func @transform_3(%arg0: i32) -> (i32, i32) {
    %c0_i32 = arith.constant 0 : i32
    %c0_i32_0 = arith.constant 0 : i32
    %c0_i32_1 = arith.constant 0 : i32
    return %c0_i32, %c0_i32_0 : i32, i32
  }
  func.func @transform_4(%arg0: i32) -> (i32, i32) {
    %c0_i32 = arith.constant 0 : i32
    %c0_i32_0 = arith.constant 0 : i32
    %c0_i32_1 = arith.constant 0 : i32
    return %c0_i32, %c0_i32_0 : i32, i32
  }
  func.func @transform_5(%arg0: i32) -> (i32, i32) {
    %c0_i32 = arith.constant 0 : i32
    %c0_i32_0 = arith.constant 0 : i32
    %c0_i32_1 = arith.constant 0 : i32
    return %c0_i32, %c0_i32_0 : i32, i32
  }
  func.func @transform_6(%arg0: i32) -> (i32, i32) {
    %c0_i32 = arith.constant 0 : i32
    %c0_i32_0 = arith.constant 0 : i32
    %c0_i32_1 = arith.constant 0 : i32
    return %c0_i32, %c0_i32_0 : i32, i32
  }
  func.func @transform_7(%arg0: i32) -> (i32, i32) {
    %c0_i32 = arith.constant 0 : i32
    %c0_i32_0 = arith.constant 0 : i32
    %c0_i32_1 = arith.constant 0 : i32
    return %c0_i32, %c0_i32_0 : i32, i32
  }
  func.func @transform_8(%arg0: i32) -> (i32, i32) {
    %c0_i32 = arith.constant 0 : i32
    %c0_i32_0 = arith.constant 0 : i32
    %c0_i32_1 = arith.constant 0 : i32
    return %c0_i32, %c0_i32_0 : i32, i32
  }
  func.func @transform_9(%arg0: i32) -> (i32, i32) {
    %c0_i32 = arith.constant 0 : i32
    %c0_i32_0 = arith.constant 0 : i32
    %c0_i32_1 = arith.constant 0 : i32
    return %c0_i32, %c0_i32_0 : i32, i32
  }
  func.func @transform_10(%arg0: i32) -> (i32, i32) {
    %c0_i32 = arith.constant 0 : i32
    %c0_i32_0 = arith.constant 0 : i32
    %c0_i32_1 = arith.constant 0 : i32
    return %c0_i32, %c0_i32_0 : i32, i32
  }
  func.func @transform_11(%arg0: i32) -> (i32, i32) {
    %c0_i32 = arith.constant 0 : i32
    %c0_i32_0 = arith.constant 0 : i32
    %c0_i32_1 = arith.constant 0 : i32
    return %c0_i32, %c0_i32_0 : i32, i32
  }
  func.func @transform_12(%arg0: i32) -> (i32, i32) {
    %c0_i32 = arith.constant 0 : i32
    %c0_i32_0 = arith.constant 0 : i32
    %c0_i32_1 = arith.constant 0 : i32
    return %c0_i32, %c0_i32_0 : i32, i32
  }
}

</mosaic_0001>

<bundles_post_ra>
// kernel: autoencoder_forward.1
= control target key start
LH: loop header
LB: loop body
LE: loop exit
PB: predicated region body
PF: predicated region fallthrough
CT: control target
= control target key end

     0   :  { %18 = vsyncpa [#allocation3], 0  ;;  %s4161_s0 = inlined_call_operand.vmem [shape: f32[16,16], index: 0, kind: input, shape index: {}]   ;;  %s4162_s1 = inlined_call_operand.vmem [shape: f32[2,32], index: 1, kind: input, shape index: {}]   ;;  %s4163_s2 = inlined_call_operand.vmem [shape: f32[14,1024], index: 2, kind: input, shape index: {}]   ;;  %s4164_s3 = inlined_call_operand.hbm [shape: f32[16,128], index: 3, kind: input, shape index: {}]   ;;  %s4165_s4 = inlined_call_operand.vmem [shape: f32[128,128], index: 4, kind: input, shape index: {}]   ;;  %s4166_s5 = inlined_call_operand.hbm [shape: bf16[1024,256], index: 5, kind: input, shape index: {}]   ;;  %s4167_s6 = inlined_call_operand.vmem [shape: f32[256,64], index: 6, kind: input, shape index: {}]   ;;  %s4168_s7 = inlined_call_operand.hbm [shape: f32[32,256], index: 7, kind: input, shape index: {}]   ;;  %s4169_s8 = inlined_call_operand.hbm [shape: bf16[256,1024], index: 8, kind: input, shape index: {}]   ;;  %s4170_s9 = inlined_call_operand.vmem [shape: f32[128,128], index: 9, kind: input, shape index: {}]   ;;  %s4171_s10 = inlined_call_operand.vmem [shape: f32[128,16], index: 10, kind: input, shape index: {}]   ;;  %s4172_s11 = inlined_call_operand.hbm [shape: f32[16,16], index: 11, kind: output, shape index: {0}]   ;;  %s4173_s12 = inlined_call_operand.vmem [shape: f32[2,64], index: 12, kind: output, shape index: {1}]  }
   0x1   :  { %19 = vsyncpa [#allocation6], 0 }
   0x2   :  { %20 = vsyncpa [#allocation9], 0 }
   0x3   :  { %21 = vsyncpa [#allocation4], 0  ;;  %s3704_s21 = smov [#allocation5]   ;;  %s3705_s23 = smov [#allocation2]  }
   0x4   :  { %s47_s22 = sshll.u32 %s3704_s21, 4  ;;  %s33_s24 = sshll.u32 %s3705_s23, 4  ;;  %s48_s22 = int_to_ptr.vmem [resolvable:$true] %s47_s22  ;;  %s34_s24 = int_to_ptr.vmem [resolvable:$true] %s33_s24 }
   0x5   :  { %s3604_s25 = scalar_lea.vmem %s48_s22, 16384  ;;  %p3609_p1 = scmp.lt.s32.totalorder %s48_s22, %s48_s22 }
   0x6   :  { %p3605_p0 = scmp.ne.s32.totalorder %s48_s22, %s3604_s25  ;;  %p3610_p2 = scmp.lt.s32.totalorder %s3604_s25, %s3604_s25 }
   0x8   :  { %p3611_p3 = por %p3610_p2, %p3609_p1 }
   0xa   :  { %p3612_p4 = pnand %p3611_p3, %p3605_p0 }
   0xc   :  { %3615 = shalt.err (!%p3612_p4)
}
   0xd   :  { %s3706_s26 = smov 128   ;;  %s3707_s27 = smov 8  }
   0xe   :  { %53 = dma.hbm_to_vmem [thread:$0]  %s4166_s5, 16384, %s48_s22, [#allocation6], %s3706_s26, %s3706_s26, %s3707_s27  }
   0xf   :  { %s3624_s30 = scalar_lea.vmem %s34_s24, 256  ;;  %p3629_p6 = scmp.lt.s32.totalorder %s34_s24, %s34_s24 }
  0x10   :  { %p3625_p5 = scmp.ne.s32.totalorder %s34_s24, %s3624_s30  ;;  %p3630_p7 = scmp.lt.s32.totalorder %s3624_s30, %s3624_s30 }
  0x12   :  { %p3631_p8 = por %p3630_p7, %p3629_p6 }
  0x14   :  { %p3632_p9 = pnand %p3631_p8, %p3625_p5 }
  0x16   :  { %3635 = shalt.err (!%p3632_p9)
}
  0x17   :  { %39 = dma.hbm_to_vmem [thread:$0]  %s4164_s3, 256, %s34_s24, [#allocation3], %s3706_s26, %s3706_s26, %s3707_s27  }
  0x18   :  { %s3708_s15 = smov [#allocation7]  }
  0x19   :  { %s61_s16 = sshll.u32 %s3708_s15, 4  ;;  %s62_s16 = int_to_ptr.vmem [resolvable:$true] %s61_s16 }
  0x1a   :  { %s3644_s17 = scalar_lea.vmem %s62_s16, 1024  ;;  %p3649_p11 = scmp.lt.s32.totalorder %s62_s16, %s62_s16 }
  0x1b   :  { %p3645_p10 = scmp.ne.s32.totalorder %s62_s16, %s3644_s17  ;;  %p3650_p12 = scmp.lt.s32.totalorder %s3644_s17, %s3644_s17 }
  0x1d   :  { %p3651_p13 = por %p3650_p12, %p3649_p11 }
  0x1f   :  { %p3652_p0 = pnand %p3651_p13, %p3645_p10 }
  0x21   :  { %3655 = shalt.err (!%p3652_p0)
}
  0x22   :  { %s3709_s5 = smov 256   ;;  %s3710_s18 = smov 16  }
  0x23   :  { %67 = dma.hbm_to_vmem [thread:$0]  %s4168_s7, 1024, %s62_s16, [#allocation6], %s3709_s5, %s3709_s5, %s3710_s18  }
  0x24   :  { %s3711_s21 = smov [#allocation8]  }
  0x25   :  { %s73_s22 = sshll.u32 %s3711_s21, 4  ;;  %s74_s22 = int_to_ptr.vmem [resolvable:$true] %s73_s22 }
  0x26   :  { %s3664_s3 = scalar_lea.vmem %s74_s22, 16384  ;;  %p3669_p2 = scmp.lt.s32.totalorder %s74_s22, %s74_s22 }
  0x27   :  { %p3665_p1 = scmp.ne.s32.totalorder %s74_s22, %s3664_s3  ;;  %p3670_p3 = scmp.lt.s32.totalorder %s3664_s3, %s3664_s3 }
  0x29   :  { %p3671_p4 = por %p3670_p3, %p3669_p2 }
  0x2b   :  { %p3672_p5 = pnand %p3671_p4, %p3665_p1 }
  0x2d   :  { %3675 = shalt.err (!%p3672_p5)
}
  0x2e   :  { %s3712_s23 = smov 512   ;;  %s3713_s24 = smov 32  }
  0x2f   :  { %79 = dma.hbm_to_vmem [thread:$0]  %s4169_s8, 16384, %s74_s22, [#allocation9], %s3712_s23, %s3712_s23, %s3713_s24  }
  0x30   :  { %3696 = dma.done.wait [#allocation3], 256  }
  0x31   :  { %3697 = vsyncadd [#allocation3], 4294967040 }
  0x32   :  { %3698 = dma.done.wait [#allocation6], 17408  }
  0x33   :  { %3699 = vsyncadd [#allocation6], 4294949888 }
  0x34   :  { %3700 = dma.done.wait [#allocation9], 16384  }
  0x35   :  { %3701 = vsyncadd [#allocation9], 4294950912  ;;  %vm101_vm0 = vcmask 130048   ;;  %v99_v0 = vld [vmem:[#allocation2 + $0x8] sm:$0xff]  ;;  %v98_v1 = vld [vmem:[#allocation2] sm:$0xff]  ;;  %vm1478_vm5 = vcmask 517120  }
  0x36   :  { %v96_v2 = vld [vmem:[%s4161_s0] sm:$0xff]  ;;  %3254 = vmatprep.subr.mxu0 %v99_v0  ;;  %v97_v3 = vld [vmem:[%s4161_s0 + $0x8] sm:$0xff]  ;;  %v237_v4 = vld [vmem:[%s4165_s4 + $0x78] sm:$0xff]  ;;  %vm1511_vm6 = vcmask 261120  }
  0x37   :  { %3258 = vmatprep.mubr.msk.f32.mxu0 %vm101_vm0, %v96_v2  ;;  %3255 = vmatpush3.msra.mxu0 %v99_v0  ;;  %v236_v5 = vld [vmem:[%s4165_s4 + $0x70] sm:$0xff]  ;;  %v235_v6 = vld [vmem:[%s4165_s4 + $0x68] sm:$0xff]  ;;  %v234_v7 = vld [vmem:[%s4165_s4 + $0x60] sm:$0xff] }
  0x38   :  { %3256 = vmatprep.subr.mxu0 %v98_v1  ;;  %3261 = vmatprep.subr.mxu1 %v237_v4  ;;  %v233_v8 = vld [vmem:[%s4165_s4 + $0x58] sm:$0xff]  ;;  %v232_v9 = vld [vmem:[%s4165_s4 + $0x50] sm:$0xff]  ;;  %v231_v10 = vld [vmem:[%s4165_s4 + $0x48] sm:$0xff] }
  0x39   :  { %3257 = vmatpush3.msra.mxu0 %v98_v1  ;;  %3262 = vmatpush3.msra.mxu1 %v237_v4  ;;  %v230_v11 = vld [vmem:[%s4165_s4 + $0x40] sm:$0xff]  ;;  %v229_v12 = vld [vmem:[%s4165_s4 + $0x38] sm:$0xff]  ;;  %v228_v13 = vld [vmem:[%s4165_s4 + $0x30] sm:$0xff] }
  0x3a   :  { %3259 = vmatmul.mubr.msk.f32.vlgmr.msra.gmra.mxu0 %vm101_vm0, %v97_v3  ;;  %3263 = vmatprep.subr.mxu1 %v236_v5  ;;  %v227_v14 = vld [vmem:[%s4165_s4 + $0x28] sm:$0xff]  ;;  %v226_v15 = vld [vmem:[%s4165_s4 + $0x20] sm:$0xff]  ;;  %v225_v16 = vld [vmem:[%s4165_s4 + $0x18] sm:$0xff] }
  0x3b   :  { %3264 = vmatpush3.msra.mxu1 %v236_v5  ;;  %v224_v17 = vld [vmem:[%s4165_s4 + $0x10] sm:$0xff]  ;;  %v223_v18 = vld [vmem:[%s4165_s4 + $0x8] sm:$0xff]  ;;  %v222_v19 = vld [vmem:[%s4165_s4] sm:$0xff] }
  0x3c   :  { %3265 = vmatprep.subr.mxu1 %v235_v6  ;;  %v3380_v20 = vld [vmem:[#allocation5 + $0x70] ss:$8 sps:$4 sm:$0xff]   ;;  %v3382_v21 = vld [vmem:[#allocation5 + $0x74] ss:$8 sps:$4 sm:$0xff]   ;;  %v3388_v1 = vld [vmem:[#allocation5 + $0x64] ss:$8 sps:$4 sm:$0xff]  }
  0x3d   :  { %3266 = vmatpush3.msra.mxu1 %v235_v6  ;;  %v3385_v22 = vld [vmem:[#allocation5 + $0x174] ss:$8 sps:$4 sm:$0xff]   ;;  %1201 = vmatprep.subr.bf16.mxu0 %v3382_v21  ;;  %v100_v23 = vld [vmem:[%s4163_s2] ss:$0 sm:$0xff]  ;;  %v183_v52 = vld [vmem:[%s4163_s2 + $0x1] ss:$0 sm:$0xff] }
  0x3e   :  { %3267 = vmatprep.subr.mxu1 %v234_v7  ;;  %1202 = vmatpush1.bf16.msra.mxu0 %v3380_v20  ;;  %v184_v55 = vld [vmem:[%s4163_s2 + $0x2] ss:$0 sm:$0xff]  ;;  %v3386_v2 = vld [vmem:[#allocation5 + $0x60] ss:$8 sps:$4 sm:$0xff]   ;;  %v3391_v3 = vld [vmem:[#allocation5 + $0x164] ss:$8 sps:$4 sm:$0xff]  }
  0x3f   :  { %3268 = vmatpush3.msra.mxu1 %v234_v7  ;;  %v3383_v62 = vld [vmem:[#allocation5 + $0x170] ss:$8 sps:$4 sm:$0xff]   ;;  %1203 = vmatprep.subr.bf16.mxu0 %v3388_v1  ;;  %v3389_v4 = vld [vmem:[#allocation5 + $0x160] ss:$8 sps:$4 sm:$0xff]   ;;  %v3394_v5 = vld [vmem:[#allocation5 + $0x54] ss:$8 sps:$4 sm:$0xff]  }
  0x40   :  { %3269 = vmatprep.subr.mxu1 %v233_v8  ;;  %v3392_v6 = vld [vmem:[#allocation5 + $0x50] ss:$8 sps:$4 sm:$0xff]   ;;  %v3397_v7 = vld [vmem:[#allocation5 + $0x154] ss:$8 sps:$4 sm:$0xff]   ;;  %v3413_v20 = vld [vmem:[#allocation5 + $0x120] ss:$8 sps:$4 sm:$0xff]  }
  0x41   :  { %3270 = vmatpush3.msra.mxu1 %v233_v8  ;;  %v3395_v8 = vld [vmem:[#allocation5 + $0x150] ss:$8 sps:$4 sm:$0xff]   ;;  %v3418_v21 = vld [vmem:[#allocation5 + $0x14] ss:$8 sps:$4 sm:$0xff]  }
  0x42   :  { %3271 = vmatprep.subr.mxu1 %v232_v9  ;;  %1204 = vmatpush1.bf16.msra.mxu0 %v3386_v2 }
  0x43   :  { %3272 = vmatpush3.msra.mxu1 %v232_v9  ;;  %1205 = vmatprep.subr.bf16.mxu0 %v3394_v5  ;;  %v3400_v9 = vld [vmem:[#allocation5 + $0x44] ss:$8 sps:$4 sm:$0xff]  }
  0x44   :  { %3273 = vmatprep.subr.mxu1 %v231_v10 }
  0x45   :  { %3274 = vmatpush3.msra.mxu1 %v231_v10  ;;  %v3398_v10 = vld [vmem:[#allocation5 + $0x40] ss:$8 sps:$4 sm:$0xff]  }
  0x46   :  { %3275 = vmatprep.subr.mxu1 %v230_v11  ;;  %1206 = vmatpush1.bf16.msra.mxu0 %v3392_v6 }
  0x47   :  { %3276 = vmatpush3.msra.mxu1 %v230_v11  ;;  %1207 = vmatprep.subr.bf16.mxu0 %v3400_v9  ;;  %v3403_v11 = vld [vmem:[#allocation5 + $0x144] ss:$8 sps:$4 sm:$0xff]  }
  0x48   :  { %3277 = vmatprep.subr.mxu1 %v229_v12 }
  0x49   :  { %3278 = vmatpush3.msra.mxu1 %v229_v12  ;;  %v3401_v12 = vld [vmem:[#allocation5 + $0x140] ss:$8 sps:$4 sm:$0xff]  }
  0x4a   :  { %3279 = vmatprep.subr.mxu1 %v228_v13  ;;  %1208 = vmatpush1.bf16.msra.mxu0 %v3398_v10 }
  0x4b   :  { %3280 = vmatpush3.msra.mxu1 %v228_v13  ;;  %v3406_v13 = vld [vmem:[#allocation5 + $0x34] ss:$8 sps:$4 sm:$0xff]  }
  0x4c   :  { %3281 = vmatprep.subr.mxu1 %v227_v14  ;;  %1209 = vmatprep.subr.bf16.mxu0 %v3406_v13 }
  0x4d   :  { %3282 = vmatpush3.msra.mxu1 %v227_v14  ;;  %v3404_v14 = vld [vmem:[#allocation5 + $0x30] ss:$8 sps:$4 sm:$0xff]  }
  0x4e   :  { %3283 = vmatprep.subr.mxu1 %v226_v15  ;;  %1210 = vmatpush1.bf16.msra.mxu0 %v3404_v14 }
  0x4f   :  { %3284 = vmatpush3.msra.mxu1 %v226_v15  ;;  %v3409_v15 = vld [vmem:[#allocation5 + $0x134] ss:$8 sps:$4 sm:$0xff]  }
  0x50   :  { %3285 = vmatprep.subr.mxu1 %v225_v16 }
  0x51   :  { %3286 = vmatpush3.msra.mxu1 %v225_v16  ;;  %v3407_v16 = vld [vmem:[#allocation5 + $0x130] ss:$8 sps:$4 sm:$0xff]  }
  0x52   :  { %3287 = vmatprep.subr.mxu1 %v224_v17 }
  0x53   :  { %3288 = vmatpush3.msra.mxu1 %v224_v17  ;;  %v3412_v17 = vld [vmem:[#allocation5 + $0x24] ss:$8 sps:$4 sm:$0xff]  }
  0x54   :  { %3289 = vmatprep.subr.mxu1 %v223_v18  ;;  %1211 = vmatprep.subr.bf16.mxu0 %v3412_v17 }
  0x55   :  { %3290 = vmatpush3.msra.mxu1 %v223_v18  ;;  %v3410_v18 = vld [vmem:[#allocation5 + $0x20] ss:$8 sps:$4 sm:$0xff]  }
  0x56   :  { %3291 = vmatprep.subr.mxu1 %v222_v19  ;;  %1212 = vmatpush1.bf16.msra.mxu0 %v3410_v18 }
  0x57   :  { %3292 = vmatpush3.msra.mxu1 %v222_v19  ;;  %v3415_v19 = vld [vmem:[#allocation5 + $0x124] ss:$8 sps:$4 sm:$0xff]   ;;  %1213 = vmatprep.subr.bf16.mxu0 %v3418_v21 }
  0x58   :  { %1242 = vmatprep.subr.bf16.mxu1 %v3385_v22  ;;  %v3416_v22 = vld [vmem:[#allocation5 + $0x10] ss:$8 sps:$4 sm:$0xff]  }
  0x5a   :  { %1214 = vmatpush1.bf16.msra.mxu0 %v3416_v22 }
  0xfa   :  { %v3260_v24 = vpop.f32.mrf.mxu0 }
  0xfb   :  { %v180_v25 = vadd.f32 %v3260_v24, %v100_v23  ;;  %v3419_v24 = vld [vmem:[#allocation5 + $0x110] ss:$8 sps:$4 sm:$0xff]  }
  0xfc   :  { %v174_v26 = vpop.f32.mrf.mxu0 }
  0xfd   :  { %v175_v27 = vadd.f32 %v174_v26, %v100_v23  ;;  %v195_v28 = vmul.f32 %v180_v25, %v180_v25  ;;  %v3421_v23 = vld [vmem:[#allocation5 + $0x114] ss:$8 sps:$4 sm:$0xff]   ;;  %v3422_v26 = vld [vmem:[#allocation5] ss:$8 sps:$4 sm:$0xff]  }
  0xff   :  { %v185_v29 = vadd.f32 %v180_v25, %v175_v27  ;;  %v194_v30 = vmul.f32 %v175_v27, %v175_v27 }
 0x101   :  { %v186_v31 = vrot.slane %v185_v29, 4  ;;  %v196_v32 = vadd.f32 %v195_v28, %v194_v30  ;;  %v3425_v28 = vld [vmem:[#allocation5 + $0x100] ss:$8 sps:$4 sm:$0xff]   ;;  %v3428_v30 = vld [vmem:[#allocation5 + $0xf0] ss:$8 sps:$4 sm:$0xff]  }
 0x103   :  { %v187_v33 = vadd.f32 %v186_v31, %v185_v29  ;;  %v197_v34 = vrot.slane %v196_v32, 4  ;;  %v3430_v29 = vld [vmem:[#allocation5 + $0xf4] ss:$8 sps:$4 sm:$0xff]  }
 0x104   :  { %v3433_v31 = vld [vmem:[#allocation5 + $0x1f4] ss:$8 sps:$4 sm:$0xff]  }
 0x105   :  { %v188_v35 = vrot.slane %v187_v33, 2  ;;  %v198_v36 = vadd.f32 %v197_v34, %v196_v32  ;;  %v3431_v32 = vld [vmem:[#allocation5 + $0x1f0] ss:$8 sps:$4 sm:$0xff]   ;;  %v3434_v34 = vld [vmem:[#allocation5 + $0xe0] ss:$8 sps:$4 sm:$0xff]  }
 0x107   :  { %v189_v37 = vadd.f32 %v188_v35, %v187_v33  ;;  %v199_v38 = vrot.slane %v198_v36, 2  ;;  %v3436_v33 = vld [vmem:[#allocation5 + $0xe4] ss:$8 sps:$4 sm:$0xff]  }
 0x108   :  { %v3439_v35 = vld [vmem:[#allocation5 + $0x1e4] ss:$8 sps:$4 sm:$0xff]  }
 0x109   :  { %v190_v39 = vrot.slane %v189_v37, 1  ;;  %v200_v40 = vadd.f32 %v199_v38, %v198_v36  ;;  %v3437_v36 = vld [vmem:[#allocation5 + $0x1e0] ss:$8 sps:$4 sm:$0xff]   ;;  %v3440_v38 = vld [vmem:[#allocation5 + $0xd0] ss:$8 sps:$4 sm:$0xff]  }
 0x10b   :  { %v191_v41 = vadd.f32 %v190_v39, %v189_v37  ;;  %v201_v42 = vrot.slane %v200_v40, 1  ;;  %v3442_v37 = vld [vmem:[#allocation5 + $0xd4] ss:$8 sps:$4 sm:$0xff]  }
 0x10c   :  { %v3445_v39 = vld [vmem:[#allocation5 + $0x1d4] ss:$8 sps:$4 sm:$0xff]  }
 0x10d   :  { %v193_v43 = vmul.f32 0.0625, %v191_v41  ;;  %v202_v44 = vadd.f32 %v201_v42, %v200_v40  ;;  %v3443_v40 = vld [vmem:[#allocation5 + $0x1d0] ss:$8 sps:$4 sm:$0xff]   ;;  %v3448_v41 = vld [vmem:[#allocation5 + $0xc4] ss:$8 sps:$4 sm:$0xff]  }
 0x10e   :  { %v3446_v42 = vld [vmem:[#allocation5 + $0xc0] ss:$8 sps:$4 sm:$0xff]  }
 0x10f   :  { %v203_v45 = vmul.f32 0.0625, %v202_v44  ;;  %v204_v46 = vmul.f32 %v193_v43, %v193_v43  ;;  %v206_v49 = vsub.f32 %v175_v27, %v193_v43  ;;  %v207_v50 = vsub.f32 %v180_v25, %v193_v43  ;;  %v3424_v25 = vld [vmem:[#allocation5 + $0x4] ss:$8 sps:$4 sm:$0xff]   ;;  %v3449_v44 = vld [vmem:[#allocation5 + $0x1c0] ss:$8 sps:$4 sm:$0xff]  }
 0x110   :  { %1215 = vmatprep.subr.bf16.mxu0 %v3424_v25  ;;  %v3427_v27 = vld [vmem:[#allocation5 + $0x104] ss:$8 sps:$4 sm:$0xff]  }
 0x111   :  { %v205_v47 = vsub.f32 %v203_v45, %v204_v46  ;;  %1216 = vmatpush1.bf16.msra.mxu0 %v3422_v26  ;;  %v3451_v43 = vld [vmem:[#allocation5 + $0x1c4] ss:$8 sps:$4 sm:$0xff]   ;;  %v3454_v45 = vld [vmem:[#allocation5 + $0xb4] ss:$8 sps:$4 sm:$0xff]   ;;  %v3452_v46 = vld [vmem:[#allocation5 + $0xb0] ss:$8 sps:$4 sm:$0xff]  }
 0x112   :  { %1217 = vmatprep.subr.bf16.mxu0 %v3430_v29  ;;  %v3714_v29 = vmov 1966171168  }
 0x113   :  { %v208_v48 = vadd.f32 1e-05, %v205_v47  ;;  %v3457_v47 = vld [vmem:[#allocation5 + $0x1b4] ss:$8 sps:$4 sm:$0xff]  }
 0x115   :  { %3572 = vrsqrt.f32 %v208_v48  ;;  %1218 = vmatpush2.bf16.msra.mxu0 %v3428_v30  ;;  %v3455_v48 = vld [vmem:[#allocation5 + $0x1b0] ss:$8 sps:$4 sm:$0xff]   ;;  %v357_v30 = vunpack.c.l.s4 %v3714_v29  ;;  %v3526_v29 = vld [vmem:[#allocation5 + $0x2f4] ss:$8 sps:$4 sm:$0xff]  }
 0x116   :  { %1219 = vmatprep.subr.bf16.mxu0 %v3436_v33 }
 0x119   :  { %1220 = vmatpush2.bf16.msra.mxu0 %v3434_v34  ;;  %v315_v34 = vld [vmem:[%s4163_s2 + $0x5] ss:$0 sm:$0xff] }
 0x11a   :  { %1221 = vmatprep.subr.bf16.mxu0 %v3442_v37  ;;  %v358_v37 = vunpack.c.0.s8 %v357_v30  ;;  %v3521_v30 = vld [vmem:[#allocation5 + $0x300] ss:$8 sps:$4 sm:$0xff]  }
 0x11d   :  { %1222 = vmatpush2.bf16.msra.mxu0 %v3440_v38 }
 0x11e   :  { %1223 = vmatprep.subr.bf16.mxu0 %v3448_v41 }
 0x121   :  { %1224 = vmatpush2.bf16.msra.mxu0 %v3446_v42 }
 0x122   :  { %v3573_v51 = vpop.eup %3572  ;;  %1225 = vmatprep.subr.bf16.mxu0 %v3454_v45 }
 0x123   :  { %v210_v53 = vmul.f32 %v3573_v51, %v206_v49  ;;  %v211_v54 = vmul.f32 %v3573_v51, %v207_v50  ;;  %v3460_v49 = vld [vmem:[#allocation5 + $0xa4] ss:$8 sps:$4 sm:$0xff]   ;;  %v3458_v50 = vld [vmem:[#allocation5 + $0xa0] ss:$8 sps:$4 sm:$0xff]  }
 0x124   :  { %v3461_v51 = vld [vmem:[#allocation5 + $0x1a0] ss:$8 sps:$4 sm:$0xff]  }
 0x125   :  { %v212_v56 = vmul.f32 %v210_v53, %v183_v52  ;;  %v213_v57 = vmul.f32 %v211_v54, %v183_v52  ;;  %1226 = vmatpush2.bf16.msra.mxu0 %v3452_v46  ;;  %v3463_v52 = vld [vmem:[#allocation5 + $0x1a4] ss:$8 sps:$4 sm:$0xff]   ;;  %v3466_v53 = vld [vmem:[#allocation5 + $0x94] ss:$8 sps:$4 sm:$0xff]   ;;  %v3464_v54 = vld [vmem:[#allocation5 + $0x90] ss:$8 sps:$4 sm:$0xff]  }
 0x126   :  { %1227 = vmatprep.subr.bf16.mxu0 %v3460_v49 }
 0x127   :  { %v214_v58 = vadd.f32 %v212_v56, %v184_v55  ;;  %v215_v59 = vadd.f32 %v213_v57, %v184_v55  ;;  %v3469_v55 = vld [vmem:[#allocation5 + $0x194] ss:$8 sps:$4 sm:$0xff]   ;;  %v3472_v56 = vld [vmem:[#allocation5 + $0x84] ss:$8 sps:$4 sm:$0xff]   ;;  %v3467_v57 = vld [vmem:[#allocation5 + $0x190] ss:$8 sps:$4 sm:$0xff]  }
 0x129   :  { %vm216_vm1 = vcmp.gt.f32.partialorder %v214_v58, 0.0  ;;  %v218_v60 = vmul.f32 0.2, %v214_v58  ;;  %vm217_vm2 = vcmp.gt.f32.partialorder %v215_v59, 0.0  ;;  %v219_v61 = vmul.f32 0.2, %v215_v59  ;;  %1228 = vmatpush2.bf16.msra.mxu0 %v3458_v50 }
 0x12a   :  { %1229 = vmatprep.subr.bf16.mxu0 %v3466_v53 }
 0x12b   :  { %v220_v63 = vsel %vm216_vm1, %v214_v58, %v218_v60  ;;  %v221_v0 = vsel %vm217_vm2, %v215_v59, %v219_v61  ;;  %v3475_v58 = vld [vmem:[#allocation5 + $0x184] ss:$8 sps:$4 sm:$0xff]   ;;  %v3470_v59 = vld [vmem:[#allocation5 + $0x80] ss:$8 sps:$4 sm:$0xff]   ;;  %v3478_v61 = vld [vmem:[#allocation5 + $0x274] ss:$8 sps:$4 sm:$0xff]  }
 0x12c   :  { %3293 = vmatprep.mubr.f32.mxu1 %v220_v63  ;;  %v3473_v60 = vld [vmem:[#allocation5 + $0x180] ss:$8 sps:$4 sm:$0xff]   ;;  %v238_v63 = vld [vmem:[%s4163_s2 + $0x3] ss:$0 sm:$0xff] }
 0x12d   :  { %3294 = vmatmul.mubr.f32.vlgmr.msra.gmra.mxu1 %v221_v0  ;;  %1230 = vmatpush2.bf16.msra.mxu0 %v3464_v54 }
 0x12e   :  { %1243 = vmatpush1.bf16.msra.mxu1 %v3383_v62  ;;  %1231 = vmatprep.subr.bf16.mxu0 %v3472_v56  ;;  %v3481_v62 = vld [vmem:[#allocation5 + $0x374] ss:$8 sps:$4 sm:$0xff]  }
 0x12f   :  { %1244 = vmatprep.subr.bf16.mxu1 %v3391_v3 }
 0x131   :  { %1232 = vmatpush2.bf16.msra.mxu0 %v3470_v59 }
 0x132   :  { %1245 = vmatpush1.bf16.msra.mxu1 %v3389_v4  ;;  %1283 = vmatprep.subr.bf16.mxu0 %v3478_v61 }
 0x133   :  { %1246 = vmatprep.subr.bf16.mxu1 %v3397_v7 }
 0x136   :  { %1247 = vmatpush1.bf16.msra.mxu1 %v3395_v8 }
 0x137   :  { %1248 = vmatprep.subr.bf16.mxu1 %v3403_v11 }
 0x13a   :  { %1249 = vmatpush1.bf16.msra.mxu1 %v3401_v12 }
 0x13b   :  { %1250 = vmatprep.subr.bf16.mxu1 %v3409_v15 }
 0x13e   :  { %1251 = vmatpush1.bf16.msra.mxu1 %v3407_v16 }
 0x13f   :  { %1252 = vmatprep.subr.bf16.mxu1 %v3415_v19 }
 0x142   :  { %1253 = vmatpush1.bf16.msra.mxu1 %v3413_v20 }
 0x143   :  { %1254 = vmatprep.subr.bf16.mxu1 %v3421_v23 }
 0x146   :  { %1255 = vmatpush1.bf16.msra.mxu1 %v3419_v24 }
 0x147   :  { %1256 = vmatprep.subr.bf16.mxu1 %v3427_v27 }
 0x14a   :  { %1257 = vmatpush1.bf16.msra.mxu1 %v3425_v28  ;;  %v314_v28 = vld [vmem:[%s4163_s2 + $0x4] ss:$0 sm:$0xff] }
 0x14b   :  { %1258 = vmatprep.subr.bf16.mxu1 %v3433_v31  ;;  %v359_v31 = vlaneseq }
 0x14d   :  { %v3875_v38 = vshrl.u32 %v359_v31, 7  ;;  %v3529_v31 = vld [vmem:[#allocation5 + $0x3f4] ss:$8 sps:$4 sm:$0xff]  }
 0x14e   :  { %1259 = vmatpush2.bf16.msra.mxu1 %v3431_v32 }
 0x14f   :  { %1260 = vmatprep.subr.bf16.mxu1 %v3439_v35 }
 0x152   :  { %1261 = vmatpush2.bf16.msra.mxu1 %v3437_v36 }
 0x153   :  { %1262 = vmatprep.subr.bf16.mxu1 %v3445_v39 }
 0x156   :  { %1263 = vmatpush2.bf16.msra.mxu1 %v3443_v40 }
 0x157   :  { %1264 = vmatprep.subr.bf16.mxu1 %v3451_v43  ;;  %v3878_v43 = vsub.s32 %v358_v37, %v3875_v38  ;;  %v3538_v37 = vld [vmem:[#allocation5 + $0x2d4] ss:$8 sps:$4 sm:$0xff]  }
 0x15a   :  { %1265 = vmatpush2.bf16.msra.mxu1 %v3449_v44 }
 0x15b   :  { %1266 = vmatprep.subr.bf16.mxu1 %v3457_v47 }
 0x15e   :  { %1267 = vmatpush2.bf16.msra.mxu1 %v3455_v48 }
 0x15f   :  { %1268 = vmatprep.subr.bf16.mxu1 %v3463_v52 }
 0x162   :  { %1269 = vmatpush2.bf16.msra.mxu1 %v3461_v51 }
 0x163   :  { %1270 = vmatprep.subr.bf16.mxu1 %v3469_v55 }
 0x166   :  { %1271 = vmatpush2.bf16.msra.mxu1 %v3467_v57  ;;  %v3476_v57 = vld [vmem:[#allocation5 + $0x270] ss:$8 sps:$4 sm:$0xff]  }
 0x167   :  { %1272 = vmatprep.subr.bf16.mxu1 %v3475_v58 }
 0x16a   :  { %1273 = vmatpush2.bf16.msra.mxu1 %v3473_v60 }
 0x16b   :  { %1324 = vmatprep.subr.bf16.mxu1 %v3481_v62  ;;  %v3479_v62 = vld [vmem:[#allocation5 + $0x370] ss:$8 sps:$4 sm:$0xff]  }
 0x1ed   :  { %v3295_v0 = vpop.f32.mrf.mxu1 }
 0x1ee   :  { %v311_v1 = vadd.f32 %v3295_v0, %v238_v63 }
 0x1ef   :  { %v305_v2 = vpop.f32.mrf.mxu1 }
 0x1f0   :  { %v306_v3 = vadd.f32 %v305_v2, %v238_v63  ;;  %v325_v4 = vmul.f32 %v311_v1, %v311_v1  ;;  %v3484_v63 = vld [vmem:[#allocation5 + $0x264] ss:$8 sps:$4 sm:$0xff]  }
 0x1f1   :  { %v3487_v2 = vld [vmem:[#allocation5 + $0x364] ss:$8 sps:$4 sm:$0xff]  }
 0x1f2   :  { %v316_v5 = vadd.f32 %v311_v1, %v306_v3  ;;  %v324_v6 = vmul.f32 %v306_v3, %v306_v3 }
 0x1f4   :  { %v317_v7 = vrot.slane %v316_v5, 4  ;;  %v326_v8 = vadd.f32 %v325_v4, %v324_v6  ;;  %v3485_v6 = vld [vmem:[#allocation5 + $0x360] ss:$8 sps:$4 sm:$0xff]  }
 0x1f6   :  { %v318_v9 = vadd.f32 %v317_v7, %v316_v5  ;;  %v327_v10 = vrot.slane %v326_v8, 4  ;;  %v3490_v5 = vld [vmem:[#allocation5 + $0x254] ss:$8 sps:$4 sm:$0xff]  }
 0x1f7   :  { %v3493_v7 = vld [vmem:[#allocation5 + $0x354] ss:$8 sps:$4 sm:$0xff]  }
 0x1f8   :  { %v319_v11 = vrot.slane %v318_v9, 2  ;;  %v328_v12 = vadd.f32 %v327_v10, %v326_v8  ;;  %v3488_v8 = vld [vmem:[#allocation5 + $0x250] ss:$8 sps:$4 sm:$0xff]  }
 0x1f9   :  { %v3491_v10 = vld [vmem:[#allocation5 + $0x350] ss:$8 sps:$4 sm:$0xff]  }
 0x1fa   :  { %v320_v13 = vadd.f32 %v319_v11, %v318_v9  ;;  %v329_v14 = vrot.slane %v328_v12, 2  ;;  %v3496_v9 = vld [vmem:[#allocation5 + $0x244] ss:$8 sps:$4 sm:$0xff]  }
 0x1fb   :  { %v3499_v11 = vld [vmem:[#allocation5 + $0x344] ss:$8 sps:$4 sm:$0xff]  }
 0x1fc   :  { %v321_v15 = vrot.slane %v320_v13, 1  ;;  %v330_v16 = vadd.f32 %v329_v14, %v328_v12  ;;  %v3494_v12 = vld [vmem:[#allocation5 + $0x240] ss:$8 sps:$4 sm:$0xff]  }
 0x1fd   :  { %v3497_v14 = vld [vmem:[#allocation5 + $0x340] ss:$8 sps:$4 sm:$0xff]  }
 0x1fe   :  { %v322_v17 = vadd.f32 %v321_v15, %v320_v13  ;;  %v331_v18 = vrot.slane %v330_v16, 1  ;;  %v3502_v13 = vld [vmem:[#allocation5 + $0x234] ss:$8 sps:$4 sm:$0xff]  }
 0x1ff   :  { %v3505_v15 = vld [vmem:[#allocation5 + $0x334] ss:$8 sps:$4 sm:$0xff]  }
 0x200   :  { %v323_v19 = vmul.f32 0.0625, %v322_v17  ;;  %v332_v20 = vadd.f32 %v331_v18, %v330_v16  ;;  %v3500_v16 = vld [vmem:[#allocation5 + $0x230] ss:$8 sps:$4 sm:$0xff]   ;;  %v3508_v17 = vld [vmem:[#allocation5 + $0x224] ss:$8 sps:$4 sm:$0xff]  }
 0x201   :  { %v3503_v18 = vld [vmem:[#allocation5 + $0x330] ss:$8 sps:$4 sm:$0xff]  }
 0x202   :  { %v333_v21 = vmul.f32 0.0625, %v332_v20  ;;  %v334_v22 = vmul.f32 %v323_v19, %v323_v19  ;;  %v336_v25 = vsub.f32 %v306_v3, %v323_v19  ;;  %v337_v26 = vsub.f32 %v311_v1, %v323_v19  ;;  %v3482_v3 = vld [vmem:[#allocation5 + $0x260] ss:$8 sps:$4 sm:$0xff]   ;;  %v3511_v19 = vld [vmem:[#allocation5 + $0x324] ss:$8 sps:$4 sm:$0xff]  }
 0x203   :  { %v3506_v20 = vld [vmem:[#allocation5 + $0x220] ss:$8 sps:$4 sm:$0xff]  }
 0x204   :  { %v335_v23 = vsub.f32 %v333_v21, %v334_v22  ;;  %v3514_v21 = vld [vmem:[#allocation5 + $0x214] ss:$8 sps:$4 sm:$0xff]   ;;  %v3509_v22 = vld [vmem:[#allocation5 + $0x320] ss:$8 sps:$4 sm:$0xff]  }
 0x206   :  { %v338_v24 = vadd.f32 1e-05, %v335_v23  ;;  %v3517_v23 = vld [vmem:[#allocation5 + $0x314] ss:$8 sps:$4 sm:$0xff]  }
 0x208   :  { %3574 = vrsqrt.f32 %v338_v24  ;;  %v3512_v24 = vld [vmem:[#allocation5 + $0x210] ss:$8 sps:$4 sm:$0xff]  }
 0x215   :  { %v3575_v27 = vpop.eup %3574 }
 0x216   :  { %v340_v32 = vmul.f32 %v3575_v27, %v336_v25  ;;  %v341_v33 = vmul.f32 %v3575_v27, %v337_v26  ;;  %v3520_v25 = vld [vmem:[#allocation5 + $0x204] ss:$8 sps:$4 sm:$0xff]   ;;  %v3515_v26 = vld [vmem:[#allocation5 + $0x310] ss:$8 sps:$4 sm:$0xff]  }
 0x217   :  { %v3523_v27 = vld [vmem:[#allocation5 + $0x304] ss:$8 sps:$4 sm:$0xff]  }
 0x218   :  { %v342_v35 = vmul.f32 %v340_v32, %v314_v28  ;;  %v343_v36 = vmul.f32 %v341_v33, %v314_v28  ;;  %v3518_v28 = vld [vmem:[#allocation5 + $0x200] ss:$8 sps:$4 sm:$0xff]   ;;  %v3524_v32 = vld [vmem:[#allocation5 + $0x2f0] ss:$8 sps:$4 sm:$0xff]   ;;  %v3532_v33 = vld [vmem:[#allocation5 + $0x2e4] ss:$8 sps:$4 sm:$0xff]  }
 0x21a   :  { %v344_v39 = vadd.f32 %v342_v35, %v315_v34  ;;  %v345_v40 = vadd.f32 %v343_v36, %v315_v34  ;;  %v3527_v34 = vld [vmem:[#allocation5 + $0x3f0] ss:$8 sps:$4 sm:$0xff]   ;;  %v3535_v35 = vld [vmem:[#allocation5 + $0x3e4] ss:$8 sps:$4 sm:$0xff]   ;;  %v3530_v36 = vld [vmem:[#allocation5 + $0x2e0] ss:$8 sps:$4 sm:$0xff]  }
 0x21c   :  { %v348_v41 = vmul.f32 0.2, %v344_v39  ;;  %vm346_vm3 = vcmp.gt.f32.partialorder %v344_v39, 0.0  ;;  %vm347_vm4 = vcmp.gt.f32.partialorder %v345_v40, 0.0  ;;  %v349_v42 = vmul.f32 0.2, %v345_v40 }
 0x21e   :  { %v350_v44 = vsel %vm346_vm3, %v344_v39, %v348_v41  ;;  %v351_v45 = vsel %vm347_vm4, %v345_v40, %v349_v42  ;;  %v3533_v39 = vld [vmem:[#allocation5 + $0x3e0] ss:$8 sps:$4 sm:$0xff]   ;;  %v3541_v40 = vld [vmem:[#allocation5 + $0x3d4] ss:$8 sps:$4 sm:$0xff]   ;;  %v3536_v41 = vld [vmem:[#allocation5 + $0x2d0] ss:$8 sps:$4 sm:$0xff]  }
 0x21f   :  { %v354_v46 = vcombine.low %v350_v44, %v351_v45  ;;  %v355_v47 = vcombine.high %v350_v44, %v351_v45  ;;  %v3544_v42 = vld [vmem:[#allocation5 + $0x2c4] ss:$8 sps:$4 sm:$0xff]   ;;  %v3539_v44 = vld [vmem:[#allocation5 + $0x3d0] ss:$8 sps:$4 sm:$0xff]  }
 0x220   :  { %v3547_v45 = vld [vmem:[#allocation5 + $0x3c4] ss:$8 sps:$4 sm:$0xff]  }
 0x221   :  { %v362_v48 = vrot.slane %v354_v46, %v3878_v43  ;;  %v3882_v49 = vrot.slane %v355_v47, %v3878_v43  ;;  %v3542_v46 = vld [vmem:[#allocation5 + $0x2c0] ss:$8 sps:$4 sm:$0xff]   ;;  %v3550_v47 = vld [vmem:[#allocation5 + $0x2b4] ss:$8 sps:$4 sm:$0xff]  }
 0x223   :  { %v370_v50 = vcombine.high %v362_v48, %v362_v48  ;;  %v378_v51 = vrot.slane %v362_v48, %v3878_v43  ;;  %v371_v52 = vcombine.high %v3882_v49, %v3882_v49  ;;  %v3545_v48 = vld [vmem:[#allocation5 + $0x3c0] ss:$8 sps:$4 sm:$0xff]  }
 0x225   :  { %v392_v53 = vrot.slane %v370_v50, %v3878_v43  ;;  %v399_v54 = vrot.slane %v371_v52, %v3878_v43  ;;  %v400_v55 = vcombine.high %v378_v51, %v378_v51  ;;  %v412_v59 = vpack.c.bf16 %v378_v51, %v378_v51  ;;  %v3553_v50 = vld [vmem:[#allocation5 + $0x3b4] ss:$8 sps:$4 sm:$0xff]   ;;  %v3548_v51 = vld [vmem:[#allocation5 + $0x2b0] ss:$8 sps:$4 sm:$0xff]   ;;  %v3556_v52 = vld [vmem:[#allocation5 + $0x2a4] ss:$8 sps:$4 sm:$0xff]  }
 0x227   :  { %v413_v56 = vpack.c.bf16 %v392_v53, %v392_v53  ;;  %v402_v58 = vcombine.high %v392_v53, %v392_v53  ;;  %v403_v60 = vcombine.high %v399_v54, %v399_v54  ;;  %v417_v0 = vpack.c.bf16 %v399_v54, %v399_v54  ;;  %v3551_v53 = vld [vmem:[#allocation5 + $0x3b0] ss:$8 sps:$4 sm:$0xff]   ;;  %v3559_v54 = vld [vmem:[#allocation5 + $0x3a4] ss:$8 sps:$4 sm:$0xff]  }
 0x228   :  { %v414_v1 = vpack.c.bf16 %v400_v55, %v400_v55  ;;  %v3554_v55 = vld [vmem:[#allocation5 + $0x2a0] ss:$8 sps:$4 sm:$0xff]  }
 0x229   :  { %1233 = vmatprep.mubr.bf16.mxu0 %v413_v56  ;;  %v415_v61 = vpack.c.bf16 %v402_v58, %v402_v58  ;;  %v419_v4 = vpack.c.bf16 %v403_v60, %v403_v60  ;;  %v3562_v56 = vld [vmem:[#allocation5 + $0x294] ss:$8 sps:$4 sm:$0xff]   ;;  %v3568_v60 = vld [vmem:[#allocation5 + $0x284] ss:$8 sps:$4 sm:$0xff]  }
 0x22a   :  { %1234 = vmatmul.mubr.bf16.vlgmr.msra.gmra.mxu0 %v412_v59  ;;  %v3565_v58 = vld [vmem:[#allocation5 + $0x394] ss:$8 sps:$4 sm:$0xff]   ;;  %v3560_v59 = vld [vmem:[#allocation5 + $0x290] ss:$8 sps:$4 sm:$0xff]  }
 0x22b   :  { %1284 = vmatpush1.bf16.msra.mxu0 %v3476_v57  ;;  %1274 = vmatprep.mubr.bf16.mxu1 %v415_v61  ;;  %v3557_v57 = vld [vmem:[#allocation5 + $0x3a0] ss:$8 sps:$4 sm:$0xff]   ;;  %v3563_v61 = vld [vmem:[#allocation5 + $0x390] ss:$8 sps:$4 sm:$0xff]  }
 0x22c   :  { %1315 = vmatprep.mubr.bf16.mxu0 %v417_v0  ;;  %1275 = vmatmul.mubr.bf16.vlgmr.msra.gmra.mxu1 %v414_v1  ;;  %v3566_v0 = vld [vmem:[#allocation5 + $0x280] ss:$8 sps:$4 sm:$0xff]  }
 0x22d   :  { %1325 = vmatpush1.bf16.msra.mxu1 %v3479_v62  ;;  %1285 = vmatprep.subr.bf16.mxu0 %v3484_v63  ;;  %v3571_v62 = vld [vmem:[#allocation5 + $0x384] ss:$8 sps:$4 sm:$0xff]   ;;  %v385_v63 = vrot.slane %v3882_v49, %v3878_v43  ;;  %v3569_v1 = vld [vmem:[#allocation5 + $0x380] ss:$8 sps:$4 sm:$0xff]  }
 0x22e   :  { %1356 = vmatprep.mubr.bf16.mxu1 %v419_v4  ;;  %1326 = vmatprep.subr.bf16.mxu1 %v3487_v2  ;;  %v1390_v49 = vld [vmem:[%s4167_s6 + $0x78] sm:$0xff] }
 0x22f   :  { %1286 = vmatpush1.bf16.msra.mxu0 %v3482_v3  ;;  %v401_v2 = vcombine.high %v385_v63, %v385_v63  ;;  %v416_v3 = vpack.c.bf16 %v385_v63, %v385_v63 }
 0x230   :  { %1287 = vmatprep.subr.bf16.mxu0 %v3490_v5  ;;  %v1406_v5 = vld [vmem:[%s4167_s6 + $0xf8] sm:$0xff] }
 0x231   :  { %1327 = vmatpush1.bf16.msra.mxu1 %v3485_v6  ;;  %v418_v4 = vpack.c.bf16 %v401_v2, %v401_v2  ;;  %v1405_v6 = vld [vmem:[%s4167_s6 + $0xf0] sm:$0xff] }
 0x232   :  { %1328 = vmatprep.subr.bf16.mxu1 %v3493_v7  ;;  %v1389_v7 = vld [vmem:[%s4167_s6 + $0x70] sm:$0xff] }
 0x233   :  { %1288 = vmatpush1.bf16.msra.mxu0 %v3488_v8  ;;  %v1404_v8 = vld [vmem:[%s4167_s6 + $0xe8] sm:$0xff] }
 0x234   :  { %1289 = vmatprep.subr.bf16.mxu0 %v3496_v9  ;;  %v1388_v9 = vld [vmem:[%s4167_s6 + $0x68] sm:$0xff] }
 0x235   :  { %1329 = vmatpush1.bf16.msra.mxu1 %v3491_v10  ;;  %v1403_v10 = vld [vmem:[%s4167_s6 + $0xe0] sm:$0xff] }
 0x236   :  { %1330 = vmatprep.subr.bf16.mxu1 %v3499_v11  ;;  %v1387_v11 = vld [vmem:[%s4167_s6 + $0x60] sm:$0xff] }
 0x237   :  { %1290 = vmatpush1.bf16.msra.mxu0 %v3494_v12  ;;  %v1402_v12 = vld [vmem:[%s4167_s6 + $0xd8] sm:$0xff] }
 0x238   :  { %1291 = vmatprep.subr.bf16.mxu0 %v3502_v13  ;;  %v1386_v13 = vld [vmem:[%s4167_s6 + $0x58] sm:$0xff] }
 0x239   :  { %1331 = vmatpush1.bf16.msra.mxu1 %v3497_v14  ;;  %v1401_v14 = vld [vmem:[%s4167_s6 + $0xd0] sm:$0xff] }
 0x23a   :  { %1332 = vmatprep.subr.bf16.mxu1 %v3505_v15  ;;  %v1385_v15 = vld [vmem:[%s4167_s6 + $0x50] sm:$0xff] }
 0x23b   :  { %1292 = vmatpush1.bf16.msra.mxu0 %v3500_v16  ;;  %v1400_v16 = vld [vmem:[%s4167_s6 + $0xc8] sm:$0xff] }
 0x23c   :  { %1293 = vmatprep.subr.bf16.mxu0 %v3508_v17  ;;  %v1384_v17 = vld [vmem:[%s4167_s6 + $0x48] sm:$0xff] }
 0x23d   :  { %1333 = vmatpush1.bf16.msra.mxu1 %v3503_v18  ;;  %v1399_v18 = vld [vmem:[%s4167_s6 + $0xc0] sm:$0xff] }
 0x23e   :  { %1334 = vmatprep.subr.bf16.mxu1 %v3511_v19  ;;  %v1383_v19 = vld [vmem:[%s4167_s6 + $0x40] sm:$0xff] }
 0x23f   :  { %1294 = vmatpush1.bf16.msra.mxu0 %v3506_v20  ;;  %v1398_v20 = vld [vmem:[%s4167_s6 + $0xb8] sm:$0xff] }
 0x240   :  { %1295 = vmatprep.subr.bf16.mxu0 %v3514_v21  ;;  %v1382_v21 = vld [vmem:[%s4167_s6 + $0x38] sm:$0xff] }
 0x241   :  { %1335 = vmatpush1.bf16.msra.mxu1 %v3509_v22  ;;  %v1397_v22 = vld [vmem:[%s4167_s6 + $0xb0] sm:$0xff] }
 0x242   :  { %1336 = vmatprep.subr.bf16.mxu1 %v3517_v23  ;;  %v1381_v23 = vld [vmem:[%s4167_s6 + $0x30] sm:$0xff] }
 0x243   :  { %1296 = vmatpush1.bf16.msra.mxu0 %v3512_v24  ;;  %v1396_v24 = vld [vmem:[%s4167_s6 + $0xa8] sm:$0xff] }
 0x244   :  { %1297 = vmatprep.subr.bf16.mxu0 %v3520_v25  ;;  %v1380_v25 = vld [vmem:[%s4167_s6 + $0x28] sm:$0xff] }
 0x245   :  { %1337 = vmatpush1.bf16.msra.mxu1 %v3515_v26  ;;  %v1395_v26 = vld [vmem:[%s4167_s6 + $0xa0] sm:$0xff] }
 0x246   :  { %1338 = vmatprep.subr.bf16.mxu1 %v3523_v27  ;;  %v1379_v27 = vld [vmem:[%s4167_s6 + $0x20] sm:$0xff] }
 0x247   :  { %1298 = vmatpush1.bf16.msra.mxu0 %v3518_v28  ;;  %v1394_v28 = vld [vmem:[%s4167_s6 + $0x98] sm:$0xff] }
 0x248   :  { %1299 = vmatprep.subr.bf16.mxu0 %v3526_v29  ;;  %v1378_v29 = vld [vmem:[%s4167_s6 + $0x18] sm:$0xff] }
 0x249   :  { %1339 = vmatpush1.bf16.msra.mxu1 %v3521_v30  ;;  %v1393_v30 = vld [vmem:[%s4167_s6 + $0x90] sm:$0xff] }
 0x24a   :  { %1340 = vmatprep.subr.bf16.mxu1 %v3529_v31  ;;  %v1377_v31 = vld [vmem:[%s4167_s6 + $0x10] sm:$0xff] }
 0x24b   :  { %1300 = vmatpush2.bf16.msra.mxu0 %v3524_v32  ;;  %v1392_v32 = vld [vmem:[%s4167_s6 + $0x88] sm:$0xff] }
 0x24c   :  { %1301 = vmatprep.subr.bf16.mxu0 %v3532_v33  ;;  %v1376_v33 = vld [vmem:[%s4167_s6 + $0x8] sm:$0xff] }
 0x24d   :  { %1341 = vmatpush2.bf16.msra.mxu1 %v3527_v34  ;;  %v1391_v34 = vld [vmem:[%s4167_s6 + $0x80] sm:$0xff] }
 0x24e   :  { %1342 = vmatprep.subr.bf16.mxu1 %v3535_v35  ;;  %v1375_v35 = vld [vmem:[%s4167_s6] sm:$0xff] }
 0x24f   :  { %1302 = vmatpush2.bf16.msra.mxu0 %v3530_v36 }
 0x250   :  { %1303 = vmatprep.subr.bf16.mxu0 %v3538_v37 }
 0x251   :  { %1343 = vmatpush2.bf16.msra.mxu1 %v3533_v39 }
 0x252   :  { %1344 = vmatprep.subr.bf16.mxu1 %v3541_v40 }
 0x253   :  { %1304 = vmatpush2.bf16.msra.mxu0 %v3536_v41 }
 0x254   :  { %1305 = vmatprep.subr.bf16.mxu0 %v3544_v42 }
 0x255   :  { %1345 = vmatpush2.bf16.msra.mxu1 %v3539_v44 }
 0x256   :  { %1346 = vmatprep.subr.bf16.mxu1 %v3547_v45 }
 0x257   :  { %1306 = vmatpush2.bf16.msra.mxu0 %v3542_v46  ;;  %v3988_v46 = vsub.s32 0, %v3875_v38 }
 0x258   :  { %1307 = vmatprep.subr.bf16.mxu0 %v3550_v47  ;;  %v2900_v47 = vld [vmem:[%s4163_s2 + $0x42] ss:$8 sm:$0x3] }
 0x259   :  { %1347 = vmatpush2.bf16.msra.mxu1 %v3545_v48  ;;  %v3994_v48 = vsub.s32 1, %v3875_v38 }
 0x25a   :  { %1348 = vmatprep.subr.bf16.mxu1 %v3553_v50  ;;  %v554_v50 = vrot.slane %v2900_v47, %v3988_v46 }
 0x25b   :  { %1308 = vmatpush2.bf16.msra.mxu0 %v3548_v51  ;;  %v558_v51 = vrot.slane %v2900_v47, %v3994_v48 }
 0x25c   :  { %1309 = vmatprep.subr.bf16.mxu0 %v3556_v52 }
 0x25d   :  { %1349 = vmatpush2.bf16.msra.mxu1 %v3551_v53 }
 0x25e   :  { %1350 = vmatprep.subr.bf16.mxu1 %v3559_v54 }
 0x25f   :  { %1310 = vmatpush2.bf16.msra.mxu0 %v3554_v55 }
 0x260   :  { %1311 = vmatprep.subr.bf16.mxu0 %v3562_v56 }
 0x261   :  { %1351 = vmatpush2.bf16.msra.mxu1 %v3557_v57 }
 0x262   :  { %1352 = vmatprep.subr.bf16.mxu1 %v3565_v58 }
 0x263   :  { %1312 = vmatpush2.bf16.msra.mxu0 %v3560_v59 }
 0x264   :  { %1313 = vmatprep.subr.bf16.mxu0 %v3568_v60 }
 0x265   :  { %1353 = vmatpush2.bf16.msra.mxu1 %v3563_v61 }
 0x266   :  { %1354 = vmatprep.subr.bf16.mxu1 %v3571_v62 }
 0x267   :  { %1314 = vmatpush2.bf16.msra.mxu0 %v3566_v0 }
 0x268   :  { %3183 = vmatprep.subr.mxu0 %v1406_v5 }
 0x269   :  { %1355 = vmatpush2.bf16.msra.mxu1 %v3569_v1 }
 0x26a   :  { %1316 = vmatmul.mubr.bf16.vlgmr.msra.gmra.mxu0 %v416_v3 }
 0x26b   :  { %3184 = vmatpush3.msra.mxu0 %v1390_v49 }
 0x26c   :  { %1357 = vmatmul.mubr.bf16.vlgmr.msra.gmra.mxu1 %v418_v4  ;;  %3185 = vmatprep.subr.mxu0 %v1405_v6 }
 0x26d   :  { %3186 = vmatpush3.msra.mxu0 %v1389_v7 }
 0x26e   :  { %3187 = vmatprep.subr.mxu0 %v1404_v8 }
 0x26f   :  { %3188 = vmatpush3.msra.mxu0 %v1388_v9 }
 0x270   :  { %3189 = vmatprep.subr.mxu0 %v1403_v10 }
 0x271   :  { %3190 = vmatpush3.msra.mxu0 %v1387_v11 }
 0x272   :  { %3191 = vmatprep.subr.mxu0 %v1402_v12 }
 0x273   :  { %3192 = vmatpush3.msra.mxu0 %v1386_v13  ;;  %v1497_v13 = vld [vmem:[#allocation7 + $0x38] sm:$0xff] }
 0x274   :  { %3193 = vmatprep.subr.mxu0 %v1401_v14  ;;  %v1496_v14 = vld [vmem:[#allocation7 + $0x30] sm:$0xff]  ;;  %1539 = vmatprep.subr.mxu1 %v1497_v13  ;;  %v1623_v13 = vld [vmem:[#allocation8 + $0xc8] sm:$0xff] }
 0x275   :  { %3194 = vmatpush3.msra.mxu0 %v1385_v15  ;;  %v1495_v15 = vld [vmem:[#allocation7 + $0x28] sm:$0xff]  ;;  %1540 = vmatpush1.msra.mxu1 %v1496_v14 }
 0x276   :  { %3195 = vmatprep.subr.mxu0 %v1400_v16  ;;  %v1494_v16 = vld [vmem:[#allocation7 + $0x20] sm:$0xff]  ;;  %1541 = vmatprep.subr.mxu1 %v1495_v15  ;;  %v1627_v14 = vld [vmem:[#allocation8 + $0xe8] sm:$0xff] }
 0x277   :  { %3196 = vmatpush3.msra.mxu0 %v1384_v17  ;;  %1542 = vmatpush1.msra.mxu1 %v1494_v16  ;;  %v3060_v16 = vcombine.high %v1623_v13, %v1627_v14 }
 0x278   :  { %3197 = vmatprep.subr.mxu0 %v1399_v18  ;;  %v1407_v18 = vld [vmem:[%s4163_s2 + $0x43] ss:$0 sm:$0xff] }
 0x279   :  { %3198 = vmatpush3.msra.mxu0 %v1383_v19 }
 0x27a   :  { %3199 = vmatprep.subr.mxu0 %v1398_v20 }
 0x27b   :  { %3200 = vmatpush3.msra.mxu0 %v1382_v21 }
 0x27c   :  { %3201 = vmatprep.subr.mxu0 %v1397_v22 }
 0x27d   :  { %3202 = vmatpush3.msra.mxu0 %v1381_v23 }
 0x27e   :  { %3203 = vmatprep.subr.mxu0 %v1396_v24  ;;  %v1493_v24 = vld [vmem:[#allocation7 + $0x18] sm:$0xff] }
 0x27f   :  { %3204 = vmatpush3.msra.mxu0 %v1380_v25  ;;  %1543 = vmatprep.subr.mxu1 %v1493_v24  ;;  %v1492_v25 = vld [vmem:[#allocation7 + $0x10] sm:$0xff]  ;;  %v1607_v24 = vld [vmem:[#allocation8 + $0x48] sm:$0xff] }
 0x280   :  { %3205 = vmatprep.subr.mxu0 %v1395_v26  ;;  %1544 = vmatpush1.msra.mxu1 %v1492_v25  ;;  %v1491_v26 = vld [vmem:[#allocation7 + $0x8] sm:$0xff] }
 0x281   :  { %3206 = vmatpush3.msra.mxu0 %v1379_v27  ;;  %1545 = vmatprep.subr.mxu1 %v1491_v26  ;;  %v1490_v27 = vld [vmem:[#allocation7] sm:$0xff]  ;;  %v1611_v26 = vld [vmem:[#allocation8 + $0x68] sm:$0xff] }
 0x282   :  { %3207 = vmatprep.subr.mxu0 %v1394_v28  ;;  %1546 = vmatpush1.msra.mxu1 %v1490_v27  ;;  %v3715_v28 = vmov 0.0  }
 0x283   :  { %3208 = vmatpush3.msra.mxu0 %v1378_v29  ;;  %1579 = vmatprep.mubr.f32.mxu1 %v3715_v28  ;;  %v1654_v29 = vld [vmem:[#allocation8 + $0x1c0] sm:$0xff]  ;;  %v3043_v28 = vcombine.low %v1607_v24, %v1611_v26 }
 0x284   :  { %3209 = vmatprep.subr.mxu0 %v1393_v30  ;;  %v1658_v30 = vld [vmem:[#allocation8 + $0x1e0] sm:$0xff] }
 0x285   :  { %3210 = vmatpush3.msra.mxu0 %v1377_v31  ;;  %v1655_v31 = vld [vmem:[#allocation8 + $0x1c8] sm:$0xff] }
 0x286   :  { %3211 = vmatprep.subr.mxu0 %v1392_v32  ;;  %v3089_v32 = vcombine.low %v1654_v29, %v1658_v30 }
 0x287   :  { %3212 = vmatpush3.msra.mxu0 %v1376_v33  ;;  %v3090_v33 = vcombine.high %v1654_v29, %v1658_v30  ;;  %v3044_v29 = vcombine.high %v1607_v24, %v1611_v26  ;;  %v1598_v30 = vld [vmem:[#allocation8] sm:$0xff] }
 0x288   :  { %3213 = vmatprep.subr.mxu0 %v1391_v34  ;;  %v1659_v34 = vld [vmem:[#allocation8 + $0x1e8] sm:$0xff]  ;;  %v1670_v24 = vld [vmem:[#allocation8 + $0x240] sm:$0xff] }
 0x289   :  { %3214 = vmatpush3.msra.mxu0 %v1375_v35  ;;  %v1646_v35 = vld [vmem:[#allocation8 + $0x180] sm:$0xff] }
 0x28a   :  { %2411 = vmatprep.subr.bf16.mxu0 %v3090_v33 }
 0x2ea   :  { %v1235_v36 = vpop.f32.mrf.mxu0 }
 0x2eb   :  { %v1236_v52 = vadd.f32 %v1235_v36, %v554_v50  ;;  %v1650_v36 = vld [vmem:[#allocation8 + $0x1a0] sm:$0xff] }
 0x2ec   :  { %v1237_v37 = vpop.f32.mrf.mxu0  ;;  %v1276_v39 = vpop.f32.mrf.mxu1 }
 0x2ed   :  { %v1238_v53 = vadd.f32 %v1237_v37, %v558_v51  ;;  %v1277_v54 = vadd.f32 %v1276_v39, %v1236_v52  ;;  %v3091_v37 = vcombine.low %v1655_v31, %v1659_v34  ;;  %v3092_v39 = vcombine.high %v1655_v31, %v1659_v34  ;;  %v1630_v51 = vld [vmem:[#allocation8 + $0x100] sm:$0xff]  ;;  %v1603_v34 = vld [vmem:[#allocation8 + $0x28] sm:$0xff] }
 0x2ee   :  { %v1239_v40 = vpop.f32.mrf.mxu0  ;;  %v1278_v41 = vpop.f32.mrf.mxu1  ;;  %v1634_v52 = vld [vmem:[#allocation8 + $0x120] sm:$0xff] }
 0x2ef   :  { %v1279_v56 = vadd.f32 %v1278_v41, %v1238_v53  ;;  %v3082_v40 = vcombine.high %v1646_v35, %v1650_v36  ;;  %2452 = vmatprep.subr.bf16.mxu1 %v3092_v39  ;;  %v3081_v41 = vcombine.low %v1646_v35, %v1650_v36  ;;  %v3066_v53 = vcombine.high %v1630_v51, %v1634_v52  ;;  %v1602_v31 = vld [vmem:[#allocation8 + $0x20] sm:$0xff] }
 0x2f0   :  { %v1240_v42 = vpop.f32.mrf.mxu0  ;;  %v1280_v44 = vpop.f32.mrf.mxu1  ;;  %v3034_v33 = vcombine.high %v1598_v30, %v1602_v31  ;;  %v3033_v35 = vcombine.low %v1598_v30, %v1602_v31  ;;  %v1718_v39 = vld [vmem:[#allocation8 + $0x3c0] sm:$0xff]  ;;  %v1675_v30 = vld [vmem:[#allocation8 + $0x268] sm:$0xff] }
 0x2f1   :  { %v1638_v42 = vld [vmem:[#allocation8 + $0x140] sm:$0xff] }
 0x2f2   :  { %v1281_v45 = vpop.f32.mrf.mxu1  ;;  %v1642_v44 = vld [vmem:[#allocation8 + $0x160] sm:$0xff] }
 0x2f3   :  { %v3074_v45 = vcombine.high %v1638_v42, %v1642_v44  ;;  %v3073_v50 = vcombine.low %v1638_v42, %v1642_v44  ;;  %v1723_v44 = vld [vmem:[#allocation8 + $0x3e8] sm:$0xff] }
 0x32a   :  { %v1317_v55 = vpop.f32.mrf.mxu0 }
 0x32b   :  { %v1318_v57 = vadd.f32 %v1317_v55, %v1277_v54  ;;  %v3065_v54 = vcombine.low %v1630_v51, %v1634_v52  ;;  %v1622_v55 = vld [vmem:[#allocation8 + $0xc0] sm:$0xff] }
 0x32c   :  { %v1319_v58 = vpop.f32.mrf.mxu0  ;;  %v1358_v59 = vpop.f32.mrf.mxu1  ;;  %v1710_v51 = vld [vmem:[#allocation8 + $0x380] sm:$0xff] }
 0x32d   :  { %v1320_v60 = vadd.f32 %v1319_v58, %v1279_v56  ;;  %v1359_v61 = vadd.f32 %v1358_v59, %v1318_v57  ;;  %v1626_v56 = vld [vmem:[#allocation8 + $0xe0] sm:$0xff] }
 0x32e   :  { %v1321_v62 = vpop.f32.mrf.mxu0  ;;  %v1360_v63 = vpop.f32.mrf.mxu1  ;;  %v3058_v57 = vcombine.high %v1622_v55, %v1626_v56  ;;  %v3057_v58 = vcombine.low %v1622_v55, %v1626_v56  ;;  %v1614_v59 = vld [vmem:[#allocation8 + $0x80] sm:$0xff]  ;;  %v1715_v55 = vld [vmem:[#allocation8 + $0x3a8] sm:$0xff] }
 0x32f   :  { %v1365_v0 = vsub.f32 0.0, %v1359_v61  ;;  %v1361_v1 = vadd.f32 %v1360_v63, %v1320_v60  ;;  %v1618_v60 = vld [vmem:[#allocation8 + $0xa0] sm:$0xff]  ;;  %v1480_v63 = vld [vmem:[%s4162_s1] sm:$0x3]  ;;  %s3717_s1 = smov [#allocation10]  }
 0x330   :  { %v1322_v2 = vpop.f32.mrf.mxu0  ;;  %v1362_v3 = vpop.f32.mrf.mxu1  ;;  %v3050_v61 = vcombine.high %v1614_v59, %v1618_v60  ;;  %v3049_v62 = vcombine.low %v1614_v59, %v1618_v60  ;;  %v1714_v52 = vld [vmem:[#allocation8 + $0x3a0] sm:$0xff]  ;;  %s2880_s0 = sshll.u32 %s3717_s1, 4  ;;  %s2881_s0 = int_to_ptr.vmem [resolvable:$true] %s2880_s0 }
 0x331   :  { %v1367_v4 = vmul.f32 1.442695, %v1365_v0  ;;  %v1366_v5 = vsub.f32 0.0, %v1361_v1  ;;  %v1647_v1 = vld [vmem:[#allocation8 + $0x188] sm:$0xff]  ;;  %v3145_v56 = vcombine.low %v1710_v51, %v1714_v52  ;;  %v1702_v59 = vld [vmem:[#allocation8 + $0x340] sm:$0xff]  ;;  %s3676_s18 = scalar_lea.vmem %s2881_s0, 256  ;;  %p3681_p7 = scmp.lt.s32.totalorder %s2881_s0, %s2881_s0 }
 0x332   :  { %v1363_v49 = vpop.f32.mrf.mxu1  ;;  %v1651_v2 = vld [vmem:[#allocation8 + $0x1a8] sm:$0xff]  ;;  %v1706_v60 = vld [vmem:[#allocation8 + $0x360] sm:$0xff]  ;;  %p3677_p6 = scmp.ne.s32.totalorder %s2881_s0, %s3676_s18  ;;  %p3682_p8 = scmp.lt.s32.totalorder %s3676_s18, %s3676_s18 }
 0x333   :  { %3576 = vpow2.f32 %v1367_v4  ;;  %v1369_v6 = vmul.f32 1.442695, %v1366_v5  ;;  %v3084_v5 = vcombine.high %v1647_v1, %v1651_v2  ;;  %v1639_v49 = vld [vmem:[#allocation8 + $0x148] sm:$0xff] }
 0x334   :  { %p3683_p9 = por %p3682_p8, %p3681_p7 }
 0x335   :  { %3578 = vpow2.f32 %v1369_v6  ;;  %v1643_v6 = vld [vmem:[#allocation8 + $0x168] sm:$0xff] }
 0x336   :  { %p3684_p10 = pnand %p3683_p9, %p3677_p6 }
 0x340   :  { %v3577_v7 = vpop.eup %3576 }
 0x341   :  { %v1371_v9 = vadd.f32 1.0, %v3577_v7  ;;  %v3083_v7 = vcombine.low %v1647_v1, %v1651_v2 }
 0x342   :  { %v3579_v8 = vpop.eup %3578 }
 0x343   :  { %v1372_v10 = vadd.f32 1.0, %v3579_v8  ;;  %v3076_v8 = vcombine.high %v1639_v49, %v1643_v6 }
 0x345   :  { %3580 = vrcp.f32 %v1372_v10  ;;  %v1635_v10 = vld [vmem:[#allocation8 + $0x128] sm:$0xff] }
 0x346   :  { %3582 = vrcp.f32 %v1371_v9  ;;  %v1631_v9 = vld [vmem:[#allocation8 + $0x108] sm:$0xff] }
 0x347   :  { %v3067_v15 = vcombine.low %v1631_v9, %v1635_v10 }
 0x352   :  { %v3581_v11 = vpop.eup %3580 }
 0x353   :  { %v3583_v12 = vpop.eup %3582  ;;  %1472 = vmatprep.mubr.f32.mxu0 %v3581_v11  ;;  %v3075_v11 = vcombine.low %v1639_v49, %v1643_v6  ;;  %v1699_v6 = vld [vmem:[#allocation8 + $0x328] sm:$0xff] }
 0x354   :  { %1473 = vmatmul.mubr.f32.vlgmr.msra.gmra.mxu0 %v3583_v12  ;;  %v3068_v12 = vcombine.high %v1631_v9, %v1635_v10  ;;  %v1686_v10 = vld [vmem:[#allocation8 + $0x2c0] sm:$0xff] }
 0x355   :  { %2412 = vmatpush1.bf16.msra.mxu0 %v3089_v32  ;;  %v1599_v32 = vld [vmem:[#allocation8 + $0x8] sm:$0xff] }
 0x356   :  { %2413 = vmatprep.subr.bf16.mxu0 %v3082_v40  ;;  %v3035_v36 = vcombine.low %v1599_v32, %v1603_v34  ;;  %v1722_v40 = vld [vmem:[#allocation8 + $0x3e0] sm:$0xff] }
 0x357   :  { %v3154_v42 = vcombine.high %v1718_v39, %v1722_v40 }
 0x359   :  { %2414 = vmatpush1.bf16.msra.mxu0 %v3081_v41  ;;  %v1719_v41 = vld [vmem:[#allocation8 + $0x3c8] sm:$0xff] }
 0x35a   :  { %2415 = vmatprep.subr.bf16.mxu0 %v3074_v45  ;;  %v3153_v45 = vcombine.low %v1718_v39, %v1722_v40 }
 0x35d   :  { %2416 = vmatpush1.bf16.msra.mxu0 %v3073_v50  ;;  %v3156_v50 = vcombine.high %v1719_v41, %v1723_v44 }
 0x35e   :  { %2417 = vmatprep.subr.bf16.mxu0 %v3066_v53  ;;  %v1711_v53 = vld [vmem:[#allocation8 + $0x388] sm:$0xff] }
 0x361   :  { %2418 = vmatpush1.bf16.msra.mxu0 %v3065_v54  ;;  %v3146_v54 = vcombine.high %v1710_v51, %v1714_v52  ;;  %v1661_v51 = vld [vmem:[#allocation8 + $0x1f8] sm:$0xff] }
 0x362   :  { %2419 = vmatprep.subr.bf16.mxu0 %v3058_v57  ;;  %v3147_v57 = vcombine.low %v1711_v53, %v1715_v55 }
 0x365   :  { %2420 = vmatpush1.bf16.msra.mxu0 %v3057_v58  ;;  %v3148_v58 = vcombine.high %v1711_v53, %v1715_v55  ;;  %v3029_v55 = vld [vmem:[%s4163_s2 + $0x44] ss:$8 sm:$0x3] }
 0x366   :  { %2421 = vmatprep.subr.bf16.mxu0 %v3050_v61  ;;  %v1703_v61 = vld [vmem:[#allocation8 + $0x348] sm:$0xff] }
 0x369   :  { %2422 = vmatpush1.bf16.msra.mxu0 %v3049_v62  ;;  %v3138_v62 = vcombine.high %v1702_v59, %v1706_v60 }
 0x414   :  { %v3215_v17 = vpop.f32.mrf.mxu0 }
 0x416   :  { %v3216_v19 = vpop.f32.mrf.mxu0 }
 0x417   :  { %v3217_v20 = vadd.f32 %v3216_v19, %v3215_v17  ;;  %v1615_v17 = vld [vmem:[#allocation8 + $0x88] sm:$0xff]  ;;  %v3059_v19 = vcombine.low %v1623_v13, %v1627_v14 }
 0x418   :  { %v1691_v14 = vld [vmem:[#allocation8 + $0x2e8] sm:$0xff] }
 0x419   :  { %v4001_v21 = vadd.f32 %v3217_v20, %v1407_v18  ;;  %v1619_v18 = vld [vmem:[#allocation8 + $0xa8] sm:$0xff] }
 0x41a   :  { %v3052_v20 = vcombine.high %v1615_v17, %v1619_v18 }
 0x41b   :  { %1479 = vst.msk [vmem:[%s4173_s12] sm:$0x3] %vm1478_vm5, %v4001_v21  ;;  %v1481_v22 = vmul.f32 0.5, %v4001_v21  ;;  %s3716_s12 = smov 96  }
 0x41d   :  { %v1482_v23 = vmul.f32 1.442695, %v1481_v22  ;;  %v1606_v22 = vld [vmem:[#allocation8 + $0x40] sm:$0xff] }
 0x41f   :  { %3584 = vpow2.f32 %v1482_v23  ;;  %v1610_v23 = vld [vmem:[#allocation8 + $0x60] sm:$0xff] }
 0x420   :  { %v3042_v25 = vcombine.high %v1606_v22, %v1610_v23  ;;  %v3041_v27 = vcombine.low %v1606_v22, %v1610_v23  ;;  %v1683_v23 = vld [vmem:[#allocation8 + $0x2a8] sm:$0xff] }
 0x422   :  { %2423 = vmatprep.subr.bf16.mxu0 %v3042_v25  ;;  %v1674_v25 = vld [vmem:[#allocation8 + $0x260] sm:$0xff] }
 0x423   :  { %2424 = vmatpush1.bf16.msra.mxu0 %v3041_v27 }
 0x424   :  { %2425 = vmatprep.subr.bf16.mxu0 %v3034_v33  ;;  %v1666_v33 = vld [vmem:[#allocation8 + $0x220] sm:$0xff] }
 0x427   :  { %2426 = vmatpush1.bf16.msra.mxu0 %v3033_v35  ;;  %v1667_v35 = vld [vmem:[#allocation8 + $0x228] sm:$0xff] }
 0x428   :  { %2427 = vmatprep.subr.bf16.mxu0 %v3154_v42 }
 0x42b   :  { %2428 = vmatpush2.bf16.msra.mxu0 %v3153_v45  ;;  %v1660_v45 = vld [vmem:[#allocation8 + $0x1f0] sm:$0xff] }
 0x42c   :  { %v3585_v47 = vpop.eup %3584  ;;  %2429 = vmatprep.subr.bf16.mxu0 %v3146_v54 }
 0x42d   :  { %1485 = vrot.lane.b32.xlu0 %v3585_v47, %s3716_s12  ;;  %v3155_v47 = vcombine.low %v1719_v41, %v1723_v44  ;;  %v1656_v44 = vld [vmem:[#allocation8 + $0x1d0] sm:$0xff] }
 0x42e   :  { %v3093_v52 = vcombine.low %v1656_v44, %v1660_v45 }
 0x42f   :  { %2430 = vmatpush2.bf16.msra.mxu0 %v3145_v56  ;;  %v1504_v56 = vrot.slane %v3029_v55, %v3988_v46 }
 0x430   :  { %2431 = vmatprep.subr.bf16.mxu0 %v3138_v62 }
 0x49f   :  { %v1486_v0 = vpop.permute.xlu0 %1485 }
 0x4a0   :  { %v1488_v3 = vmul.f32 %v1486_v0, %v1480_v63  ;;  %v1707_v63 = vld [vmem:[#allocation8 + $0x368] sm:$0xff]  ;;  %v3137_v0 = vcombine.low %v1702_v59, %v1706_v60 }
 0x4a1   :  { %v3139_v1 = vcombine.low %v1703_v61, %v1707_v63  ;;  %v3140_v2 = vcombine.high %v1703_v61, %v1707_v63 }
 0x4a2   :  { %v1489_v4 = vadd.f32 %v1488_v3, %v4001_v21  ;;  %v3051_v21 = vcombine.low %v1615_v17, %v1619_v18  ;;  %2432 = vmatpush2.bf16.msra.mxu0 %v3137_v0  ;;  %v1694_v3 = vld [vmem:[#allocation8 + $0x300] sm:$0xff] }
 0x4a3   :  { %v1678_v18 = vld [vmem:[#allocation8 + $0x280] sm:$0xff] }
 0x4a4   :  { %3030 = vmatmul.mubr.msk.f32.vlgmr.msra.gmra.mxu1 %vm1511_vm6, %v1489_v4  ;;  %v1698_v4 = vld [vmem:[#allocation8 + $0x320] sm:$0xff] }
 0x4a5   :  { %2453 = vmatpush1.bf16.msra.mxu1 %v3091_v37  ;;  %v3036_v37 = vcombine.high %v1599_v32, %v1603_v34  ;;  %v3130_v49 = vcombine.high %v1694_v3, %v1698_v4  ;;  %v1662_v32 = vld [vmem:[#allocation8 + $0x200] sm:$0xff]  ;;  %v1663_v34 = vld [vmem:[#allocation8 + $0x208] sm:$0xff] }
 0x4a6   :  { %2454 = vmatprep.subr.bf16.mxu1 %v3084_v5  ;;  %v1695_v5 = vld [vmem:[#allocation8 + $0x308] sm:$0xff]  ;;  %v3098_v39 = vcombine.high %v1662_v32, %v1666_v33  ;;  %v3100_v40 = vcombine.high %v1663_v34, %v1667_v35  ;;  %v3097_v41 = vcombine.low %v1662_v32, %v1666_v33  ;;  %v3099_v42 = vcombine.low %v1663_v34, %v1667_v35  ;;  %v1628_v32 = vld [vmem:[#allocation8 + $0xf0] sm:$0xff]  ;;  %v1625_v33 = vld [vmem:[#allocation8 + $0xd8] sm:$0xff] }
 0x4a7   :  { %v3132_v9 = vcombine.high %v1695_v5, %v1699_v6  ;;  %2433 = vmatprep.subr.bf16.mxu0 %v3130_v49  ;;  %v1629_v34 = vld [vmem:[#allocation8 + $0xf8] sm:$0xff] }
 0x4a9   :  { %2455 = vmatpush1.bf16.msra.mxu1 %v3083_v7  ;;  %v3129_v7 = vcombine.low %v1694_v3, %v1698_v4 }
 0x4aa   :  { %2456 = vmatprep.subr.bf16.mxu1 %v3076_v8  ;;  %v3131_v8 = vcombine.low %v1695_v5, %v1699_v6  ;;  %v1648_v6 = vld [vmem:[#allocation8 + $0x190] sm:$0xff] }
 0x4ab   :  { %2434 = vmatpush2.bf16.msra.mxu0 %v3129_v7 }
 0x4ad   :  { %2457 = vmatpush1.bf16.msra.mxu1 %v3075_v11  ;;  %v1690_v11 = vld [vmem:[#allocation8 + $0x2e0] sm:$0xff] }
 0x4ae   :  { %2458 = vmatprep.subr.bf16.mxu1 %v3068_v12  ;;  %v1687_v12 = vld [vmem:[#allocation8 + $0x2c8] sm:$0xff]  ;;  %v3122_v13 = vcombine.high %v1686_v10, %v1690_v11 }
 0x4af   :  { %v3124_v17 = vcombine.high %v1687_v12, %v1691_v14 }
 0x4b0   :  { %2435 = vmatprep.subr.bf16.mxu0 %v3122_v13  ;;  %v1640_v13 = vld [vmem:[#allocation8 + $0x150] sm:$0xff] }
 0x4b1   :  { %2459 = vmatpush1.bf16.msra.mxu1 %v3067_v15  ;;  %v3121_v15 = vcombine.low %v1686_v10, %v1690_v11  ;;  %v1653_v10 = vld [vmem:[#allocation8 + $0x1b8] sm:$0xff] }
 0x4b2   :  { %2460 = vmatprep.subr.bf16.mxu1 %v3060_v16  ;;  %v3123_v16 = vcombine.low %v1687_v12, %v1691_v14 }
 0x4b3   :  { %2436 = vmatpush2.bf16.msra.mxu0 %v3121_v15 }
 0x4b5   :  { %2461 = vmatpush1.bf16.msra.mxu1 %v3059_v19  ;;  %v1682_v19 = vld [vmem:[#allocation8 + $0x2a0] sm:$0xff] }
 0x4b6   :  { %2462 = vmatprep.subr.bf16.mxu1 %v3052_v20  ;;  %v1679_v20 = vld [vmem:[#allocation8 + $0x288] sm:$0xff]  ;;  %v3114_v22 = vcombine.high %v1678_v18, %v1682_v19 }
 0x4b7   :  { %v3115_v26 = vcombine.low %v1679_v20, %v1683_v23  ;;  %v3116_v27 = vcombine.high %v1679_v20, %v1683_v23  ;;  %v1632_v23 = vld [vmem:[#allocation8 + $0x110] sm:$0xff] }
 0x4b8   :  { %2437 = vmatprep.subr.bf16.mxu0 %v3114_v22 }
 0x4b9   :  { %2463 = vmatpush1.bf16.msra.mxu1 %v3051_v21  ;;  %v3113_v21 = vcombine.low %v1678_v18, %v1682_v19  ;;  %v1645_v18 = vld [vmem:[#allocation8 + $0x178] sm:$0xff] }
 0x4ba   :  { %2464 = vmatprep.subr.bf16.mxu1 %v3044_v29  ;;  %v1671_v29 = vld [vmem:[#allocation8 + $0x248] sm:$0xff] }
 0x4bb   :  { %v3108_v31 = vcombine.high %v1671_v29, %v1675_v30  ;;  %2438 = vmatpush2.bf16.msra.mxu0 %v3113_v21 }
 0x4bd   :  { %2465 = vmatpush1.bf16.msra.mxu1 %v3043_v28  ;;  %v3106_v28 = vcombine.high %v1670_v24, %v1674_v25 }
 0x4be   :  { %2466 = vmatprep.subr.bf16.mxu1 %v3036_v37  ;;  %v3107_v37 = vcombine.low %v1671_v29, %v1675_v30 }
 0x4bf   :  { %2439 = vmatprep.subr.bf16.mxu0 %v3106_v28 }
 0x4c1   :  { %2467 = vmatpush1.bf16.msra.mxu1 %v3035_v36  ;;  %v3105_v36 = vcombine.low %v1670_v24, %v1674_v25  ;;  %v1636_v24 = vld [vmem:[#allocation8 + $0x130] sm:$0xff]  ;;  %v1633_v25 = vld [vmem:[#allocation8 + $0x118] sm:$0xff] }
 0x4c2   :  { %2468 = vmatprep.subr.bf16.mxu1 %v3156_v50  ;;  %v3094_v50 = vcombine.high %v1656_v44, %v1660_v45  ;;  %v3070_v29 = vcombine.high %v1632_v23, %v1636_v24  ;;  %v3069_v35 = vcombine.low %v1632_v23, %v1636_v24  ;;  %v1621_v44 = vld [vmem:[#allocation8 + $0xb8] sm:$0xff] }
 0x4c3   :  { %2440 = vmatpush2.bf16.msra.mxu0 %v3105_v36  ;;  %v1709_v23 = vld [vmem:[#allocation8 + $0x378] sm:$0xff] }
 0x4c4   :  { %2441 = vmatprep.subr.bf16.mxu0 %v3098_v39  ;;  %v3064_v39 = vcombine.high %v1625_v33, %v1629_v34 }
 0x4c5   :  { %2469 = vmatpush2.bf16.msra.mxu1 %v3155_v47  ;;  %v1657_v47 = vld [vmem:[#allocation8 + $0x1d8] sm:$0xff] }
 0x4c6   :  { %2470 = vmatprep.subr.bf16.mxu1 %v3148_v58  ;;  %v3095_v53 = vcombine.low %v1657_v47, %v1661_v51  ;;  %v3096_v54 = vcombine.high %v1657_v47, %v1661_v51  ;;  %v3063_v47 = vcombine.low %v1625_v33, %v1629_v34 }
 0x4c7   :  { %2442 = vmatpush2.bf16.msra.mxu0 %v3097_v41  ;;  %v1620_v41 = vld [vmem:[#allocation8 + $0xb0] sm:$0xff] }
 0x4c8   :  { %2493 = vmatprep.subr.bf16.mxu0 %v3094_v50 }
 0x4c9   :  { %2471 = vmatpush2.bf16.msra.mxu1 %v3147_v57  ;;  %v1508_v57 = vrot.slane %v3029_v55, %v3994_v48  ;;  %v1613_v55 = vld [vmem:[#allocation8 + $0x78] sm:$0xff] }
 0x4ca   :  { %2472 = vmatprep.subr.bf16.mxu1 %v3140_v2 }
 0x4cd   :  { %2473 = vmatpush2.bf16.msra.mxu1 %v3139_v1 }
 0x4ce   :  { %2474 = vmatprep.subr.bf16.mxu1 %v3132_v9  ;;  %v1649_v9 = vld [vmem:[#allocation8 + $0x198] sm:$0xff] }
 0x4cf   :  { %v3088_v15 = vcombine.high %v1649_v9, %v1653_v10  ;;  %v3087_v20 = vcombine.low %v1649_v9, %v1653_v10 }
 0x4d1   :  { %2475 = vmatpush2.bf16.msra.mxu1 %v3131_v8  ;;  %v1652_v8 = vld [vmem:[#allocation8 + $0x1b0] sm:$0xff] }
 0x4d2   :  { %2476 = vmatprep.subr.bf16.mxu1 %v3124_v17  ;;  %v3086_v14 = vcombine.high %v1648_v6, %v1652_v8  ;;  %v1641_v17 = vld [vmem:[#allocation8 + $0x158] sm:$0xff]  ;;  %v3085_v19 = vcombine.low %v1648_v6, %v1652_v8 }
 0x4d3   :  { %v3080_v22 = vcombine.high %v1641_v17, %v1645_v18  ;;  %v3079_v28 = vcombine.low %v1641_v17, %v1645_v18  ;;  %v1725_v6 = vld [vmem:[#allocation8 + $0x3f8] sm:$0xff] }
 0x4d5   :  { %2477 = vmatpush2.bf16.msra.mxu1 %v3123_v16  ;;  %v1644_v16 = vld [vmem:[#allocation8 + $0x170] sm:$0xff] }
 0x4d6   :  { %2478 = vmatprep.subr.bf16.mxu1 %v3116_v27  ;;  %v3078_v21 = vcombine.high %v1640_v13, %v1644_v16  ;;  %v3077_v27 = vcombine.low %v1640_v13, %v1644_v16  ;;  %v1716_v13 = vld [vmem:[#allocation8 + $0x3b0] sm:$0xff] }
 0x4d9   :  { %2479 = vmatpush2.bf16.msra.mxu1 %v3115_v26  ;;  %v1637_v26 = vld [vmem:[#allocation8 + $0x138] sm:$0xff] }
 0x4da   :  { %2480 = vmatprep.subr.bf16.mxu1 %v3108_v31  ;;  %v3072_v30 = vcombine.high %v1633_v25, %v1637_v26  ;;  %v1624_v31 = vld [vmem:[#allocation8 + $0xd0] sm:$0xff]  ;;  %v3071_v36 = vcombine.low %v1633_v25, %v1637_v26 }
 0x4db   :  { %v3061_v45 = vcombine.low %v1624_v31, %v1628_v32 }
 0x4dd   :  { %2481 = vmatpush2.bf16.msra.mxu1 %v3107_v37  ;;  %v3062_v37 = vcombine.high %v1624_v31, %v1628_v32  ;;  %v1701_v31 = vld [vmem:[#allocation8 + $0x338] sm:$0xff] }
 0x4de   :  { %2482 = vmatprep.subr.bf16.mxu1 %v3100_v40  ;;  %v1616_v40 = vld [vmem:[#allocation8 + $0x90] sm:$0xff] }
 0x4df   :  { %v3054_v50 = vcombine.high %v1616_v40, %v1620_v41 }
 0x4e1   :  { %2483 = vmatpush2.bf16.msra.mxu1 %v3099_v42  ;;  %v1617_v42 = vld [vmem:[#allocation8 + $0x98] sm:$0xff] }
 0x4e2   :  { %2534 = vmatprep.subr.bf16.mxu1 %v3096_v54  ;;  %v3056_v51 = vcombine.high %v1617_v42, %v1621_v44  ;;  %v1609_v54 = vld [vmem:[#allocation8 + $0x58] sm:$0xff] }
 0x564   :  { %v1581_v58 = vpop.f32.mrf.mxu1 }
 0x565   :  { %v1582_v59 = vadd.f32 %v1581_v58, %v1504_v56  ;;  %v3053_v56 = vcombine.low %v1616_v40, %v1620_v41  ;;  %v1693_v40 = vld [vmem:[#allocation8 + $0x2f8] sm:$0xff] }
 0x566   :  { %v1583_v60 = vpop.f32.mrf.mxu1 }
 0x567   :  { %v1586_v61 = vsub.f32 0.0, %v1582_v59  ;;  %v1584_v62 = vadd.f32 %v1583_v60, %v1508_v57  ;;  %v3055_v57 = vcombine.low %v1617_v42, %v1621_v44  ;;  %v3048_v59 = vcombine.high %v1609_v54, %v1613_v55  ;;  %v1600_v60 = vld [vmem:[#allocation8 + $0x10] sm:$0xff] }
 0x569   :  { %v1588_v63 = vmul.f32 1.442695, %v1586_v61  ;;  %v1587_v0 = vsub.f32 0.0, %v1584_v62  ;;  %v1604_v61 = vld [vmem:[#allocation8 + $0x30] sm:$0xff]  ;;  %v1601_v62 = vld [vmem:[#allocation8 + $0x18] sm:$0xff] }
 0x56b   :  { %3586 = vpow2.f32 %v1588_v63  ;;  %v1590_v1 = vmul.f32 1.442695, %v1587_v0  ;;  %v1605_v63 = vld [vmem:[#allocation8 + $0x38] sm:$0xff] }
 0x56c   :  { %v3039_v8 = vcombine.low %v1601_v62, %v1605_v63 }
 0x56d   :  { %3588 = vpow2.f32 %v1590_v1  ;;  %v3047_v1 = vcombine.low %v1609_v54, %v1613_v55 }
 0x578   :  { %v3587_v2 = vpop.eup %3586 }
 0x579   :  { %v1592_v3 = vadd.f32 1.0, %v3587_v2  ;;  %v3038_v2 = vcombine.high %v1600_v60, %v1604_v61 }
 0x57a   :  { %v3589_v4 = vpop.eup %3588 }
 0x57b   :  { %v1593_v5 = vadd.f32 1.0, %v3589_v4  ;;  %3590 = vrcp.f32 %v1592_v3  ;;  %v3040_v3 = vcombine.high %v1601_v62, %v1605_v63  ;;  %v1720_v4 = vld [vmem:[#allocation8 + $0x3d0] sm:$0xff] }
 0x57d   :  { %3592 = vrcp.f32 %v1593_v5  ;;  %v1724_v5 = vld [vmem:[#allocation8 + $0x3f0] sm:$0xff] }
 0x57e   :  { %v3158_v9 = vcombine.high %v1720_v4, %v1724_v5  ;;  %v3157_v16 = vcombine.low %v1720_v4, %v1724_v5  ;;  %v1669_v4 = vld [vmem:[#allocation8 + $0x238] sm:$0xff] }
 0x588   :  { %v3591_v49 = vpop.eup %3590 }
 0x589   :  { %v4017_v12 = vpack.c.bf16 %v3591_v49, %v3591_v49  ;;  %v1721_v49 = vld [vmem:[#allocation8 + $0x3d8] sm:$0xff] }
 0x58a   :  { %v3593_v7 = vpop.eup %3592  ;;  %v3160_v10 = vcombine.high %v1721_v49, %v1725_v6  ;;  %v3159_v17 = vcombine.low %v1721_v49, %v1725_v6 }
 0x58b   :  { %v1597_v11 = vpack.c.bf16 %v3593_v7, %v3593_v7  ;;  %v3037_v7 = vcombine.low %v1600_v60, %v1604_v61  ;;  %v1677_v60 = vld [vmem:[#allocation8 + $0x278] sm:$0xff] }
 0x58d   :  { %2443 = vmatprep.mubr.bf16.mxu0 %v1597_v11  ;;  %2484 = vmatprep.mubr.bf16.mxu1 %v1597_v11 }
 0x58e   :  { %2444 = vmatmul.mubr.bf16.vlgmr.msra.gmra.mxu0 %v4017_v12  ;;  %2485 = vmatmul.mubr.bf16.vlgmr.msra.gmra.mxu1 %v4017_v12 }
 0x58f   :  { %2494 = vmatpush1.bf16.msra.mxu0 %v3093_v52  ;;  %2535 = vmatpush1.bf16.msra.mxu1 %v3095_v53  ;;  %v1608_v52 = vld [vmem:[#allocation8 + $0x50] sm:$0xff] }
 0x590   :  { %2525 = vmatprep.mubr.bf16.mxu0 %v1597_v11  ;;  %2566 = vmatprep.mubr.bf16.mxu1 %v1597_v11  ;;  %v1612_v53 = vld [vmem:[#allocation8 + $0x70] sm:$0xff] }
 0x591   :  { %2495 = vmatprep.subr.bf16.mxu0 %v3086_v14  ;;  %2536 = vmatprep.subr.bf16.mxu1 %v3088_v15  ;;  %v3046_v58 = vcombine.high %v1608_v52, %v1612_v53  ;;  %v3045_v0 = vcombine.low %v1608_v52, %v1612_v53  ;;  %v1712_v11 = vld [vmem:[#allocation8 + $0x390] sm:$0xff]  ;;  %v1713_v14 = vld [vmem:[#allocation8 + $0x398] sm:$0xff] }
 0x592   :  { %v1717_v15 = vld [vmem:[#allocation8 + $0x3b8] sm:$0xff]  ;;  %v3150_v18 = vcombine.high %v1712_v11, %v1716_v13  ;;  %v3149_v24 = vcombine.low %v1712_v11, %v1716_v13  ;;  %v2665_v11 = vld [vmem:[%s4170_s9 + $0x70] sm:$0xff] }
 0x593   :  { %2496 = vmatpush1.bf16.msra.mxu0 %v3085_v19  ;;  %2537 = vmatpush1.bf16.msra.mxu1 %v3087_v20  ;;  %v3152_v19 = vcombine.high %v1713_v14, %v1717_v15  ;;  %v1704_v20 = vld [vmem:[#allocation8 + $0x350] sm:$0xff]  ;;  %v3151_v25 = vcombine.low %v1713_v14, %v1717_v15  ;;  %v1685_v52 = vld [vmem:[#allocation8 + $0x2b8] sm:$0xff]  ;;  %v2662_v14 = vld [vmem:[%s4170_s9 + $0x58] sm:$0xff] }
 0x594   :  { %2497 = vmatprep.subr.bf16.mxu0 %v3078_v21  ;;  %2538 = vmatprep.subr.bf16.mxu1 %v3080_v22  ;;  %v1708_v21 = vld [vmem:[#allocation8 + $0x370] sm:$0xff]  ;;  %v1705_v22 = vld [vmem:[#allocation8 + $0x358] sm:$0xff]  ;;  %v2661_v15 = vld [vmem:[%s4170_s9 + $0x50] sm:$0xff] }
 0x595   :  { %v3142_v26 = vcombine.high %v1704_v20, %v1708_v21  ;;  %v3141_v32 = vcombine.low %v1704_v20, %v1708_v21  ;;  %v3143_v33 = vcombine.low %v1705_v22, %v1709_v23  ;;  %v2664_v13 = vld [vmem:[%s4170_s9 + $0x68] sm:$0xff]  ;;  %v2655_v21 = vld [vmem:[%s4170_s9 + $0x20] sm:$0xff] }
 0x596   :  { %v2656_v20 = vld [vmem:[%s4170_s9 + $0x28] sm:$0xff] }
 0x597   :  { %2498 = vmatpush1.bf16.msra.mxu0 %v3077_v27  ;;  %2539 = vmatpush1.bf16.msra.mxu1 %v3079_v28  ;;  %v3144_v27 = vcombine.high %v1705_v22, %v1709_v23  ;;  %v1696_v28 = vld [vmem:[#allocation8 + $0x310] sm:$0xff]  ;;  %v2654_v22 = vld [vmem:[%s4170_s9 + $0x18] sm:$0xff]  ;;  %v2653_v23 = vld [vmem:[%s4170_s9 + $0x10] sm:$0xff] }
 0x598   :  { %2499 = vmatprep.subr.bf16.mxu0 %v3070_v29  ;;  %2540 = vmatprep.subr.bf16.mxu1 %v3072_v30  ;;  %v1700_v29 = vld [vmem:[#allocation8 + $0x330] sm:$0xff]  ;;  %v1697_v30 = vld [vmem:[#allocation8 + $0x318] sm:$0xff] }
 0x599   :  { %v3134_v34 = vcombine.high %v1696_v28, %v1700_v29  ;;  %v3133_v41 = vcombine.low %v1696_v28, %v1700_v29  ;;  %v3135_v42 = vcombine.low %v1697_v30, %v1701_v31  ;;  %v1741_v29 = vsub.s32 2, %v3875_v38 }
 0x59b   :  { %2500 = vmatpush1.bf16.msra.mxu0 %v3069_v35  ;;  %2541 = vmatpush1.bf16.msra.mxu1 %v3071_v36  ;;  %v3136_v35 = vcombine.high %v1697_v30, %v1701_v31  ;;  %v1688_v36 = vld [vmem:[#allocation8 + $0x2d0] sm:$0xff]  ;;  %v1745_v30 = vsub.s32 3, %v3875_v38 }
 0x59c   :  { %2501 = vmatprep.subr.bf16.mxu0 %v3062_v37  ;;  %2542 = vmatprep.subr.bf16.mxu1 %v3064_v39  ;;  %v1692_v37 = vld [vmem:[#allocation8 + $0x2f0] sm:$0xff]  ;;  %v1689_v39 = vld [vmem:[#allocation8 + $0x2d8] sm:$0xff] }
 0x59d   :  { %v3126_v44 = vcombine.high %v1688_v36, %v1692_v37  ;;  %v3125_v53 = vcombine.low %v1688_v36, %v1692_v37  ;;  %v3127_v54 = vcombine.low %v1689_v39, %v1693_v40 }
 0x59f   :  { %2502 = vmatpush1.bf16.msra.mxu0 %v3061_v45  ;;  %2543 = vmatpush1.bf16.msra.mxu1 %v3063_v47  ;;  %v3128_v45 = vcombine.high %v1689_v39, %v1693_v40  ;;  %v1680_v47 = vld [vmem:[#allocation8 + $0x290] sm:$0xff] }
 0x5a0   :  { %2503 = vmatprep.subr.bf16.mxu0 %v3054_v50  ;;  %2544 = vmatprep.subr.bf16.mxu1 %v3056_v51  ;;  %v1684_v50 = vld [vmem:[#allocation8 + $0x2b0] sm:$0xff]  ;;  %v1681_v51 = vld [vmem:[#allocation8 + $0x298] sm:$0xff] }
 0x5a1   :  { %v3118_v55 = vcombine.high %v1680_v47, %v1684_v50  ;;  %v3117_v61 = vcombine.low %v1680_v47, %v1684_v50  ;;  %v3119_v62 = vcombine.low %v1681_v51, %v1685_v52 }
 0x5a3   :  { %2504 = vmatpush1.bf16.msra.mxu0 %v3053_v56  ;;  %2545 = vmatpush1.bf16.msra.mxu1 %v3055_v57  ;;  %v3120_v56 = vcombine.high %v1681_v51, %v1685_v52  ;;  %v1672_v57 = vld [vmem:[#allocation8 + $0x250] sm:$0xff] }
 0x5a4   :  { %2505 = vmatprep.subr.bf16.mxu0 %v3046_v58  ;;  %2546 = vmatprep.subr.bf16.mxu1 %v3048_v59  ;;  %v1676_v58 = vld [vmem:[#allocation8 + $0x270] sm:$0xff]  ;;  %v1673_v59 = vld [vmem:[#allocation8 + $0x258] sm:$0xff] }
 0x5a5   :  { %v3110_v63 = vcombine.high %v1672_v57, %v1676_v58  ;;  %v3109_v5 = vcombine.low %v1672_v57, %v1676_v58  ;;  %v3111_v49 = vcombine.low %v1673_v59, %v1677_v60  ;;  %v1757_v57 = vsub.s32 6, %v3875_v38 }
 0x5a6   :  { %v1753_v58 = vsub.s32 5, %v3875_v38 }
 0x5a7   :  { %2506 = vmatpush1.bf16.msra.mxu0 %v3045_v0  ;;  %2547 = vmatpush1.bf16.msra.mxu1 %v3047_v1  ;;  %v3112_v0 = vcombine.high %v1673_v59, %v1677_v60  ;;  %v1664_v1 = vld [vmem:[#allocation8 + $0x210] sm:$0xff]  ;;  %v1761_v59 = vsub.s32 7, %v3875_v38 }
 0x5a8   :  { %2507 = vmatprep.subr.bf16.mxu0 %v3038_v2  ;;  %2548 = vmatprep.subr.bf16.mxu1 %v3040_v3  ;;  %v1668_v2 = vld [vmem:[#allocation8 + $0x230] sm:$0xff]  ;;  %v1665_v3 = vld [vmem:[#allocation8 + $0x218] sm:$0xff] }
 0x5a9   :  { %v3102_v6 = vcombine.high %v1664_v1, %v1668_v2 }
 0x5ab   :  { %2508 = vmatpush1.bf16.msra.mxu0 %v3037_v7  ;;  %2549 = vmatpush1.bf16.msra.mxu1 %v3039_v8  ;;  %v3104_v7 = vcombine.high %v1665_v3, %v1669_v4  ;;  %v3101_v8 = vcombine.low %v1664_v1, %v1668_v2 }
 0x5ac   :  { %2509 = vmatprep.subr.bf16.mxu0 %v3158_v9  ;;  %2550 = vmatprep.subr.bf16.mxu1 %v3160_v10  ;;  %v3103_v9 = vcombine.low %v1665_v3, %v1669_v4  ;;  %v2666_v10 = vld [vmem:[%s4170_s9 + $0x78] sm:$0xff] }
 0x5af   :  { %2510 = vmatpush2.bf16.msra.mxu0 %v3157_v16  ;;  %2551 = vmatpush2.bf16.msra.mxu1 %v3159_v17  ;;  %v2660_v16 = vld [vmem:[%s4170_s9 + $0x48] sm:$0xff]  ;;  %v2659_v17 = vld [vmem:[%s4170_s9 + $0x40] sm:$0xff] }
 0x5b0   :  { %2511 = vmatprep.subr.bf16.mxu0 %v3150_v18  ;;  %2552 = vmatprep.subr.bf16.mxu1 %v3152_v19  ;;  %v2658_v18 = vld [vmem:[%s4170_s9 + $0x38] sm:$0xff]  ;;  %v2657_v19 = vld [vmem:[%s4170_s9 + $0x30] sm:$0xff] }
 0x5b3   :  { %2512 = vmatpush2.bf16.msra.mxu0 %v3149_v24  ;;  %2553 = vmatpush2.bf16.msra.mxu1 %v3151_v25  ;;  %v2652_v24 = vld [vmem:[%s4170_s9 + $0x8] sm:$0xff]  ;;  %v2651_v25 = vld [vmem:[%s4170_s9] sm:$0xff] }
 0x5b4   :  { %2513 = vmatprep.subr.bf16.mxu0 %v3142_v26  ;;  %2554 = vmatprep.subr.bf16.mxu1 %v3144_v27  ;;  %v3031_v26 = vld [vmem:[%s4163_s2 + $0x45] ss:$8 sm:$0xf] }
 0x5b5   :  { %v3032_v27 = vld [vmem:[%s4163_s2 + $0x45] ss:$8 sm:$0xf0] }
 0x5b6   :  { %v1729_v28 = vor.u32 %v3032_v27, %v3031_v26  ;;  %v2791_v26 = vld [vmem:[%s4171_s10 + $0x50] sm:$0xff]  ;;  %v2790_v27 = vld [vmem:[%s4171_s10 + $0x48] sm:$0xff] }
 0x5b7   :  { %2514 = vmatpush2.bf16.msra.mxu0 %v3141_v32  ;;  %2555 = vmatpush2.bf16.msra.mxu1 %v3143_v33 }
 0x5b8   :  { %2515 = vmatprep.subr.bf16.mxu0 %v3134_v34  ;;  %2556 = vmatprep.subr.bf16.mxu1 %v3136_v35  ;;  %v1734_v31 = vrot.slane %v1729_v28, %v3988_v46  ;;  %v1742_v32 = vrot.slane %v1729_v28, %v1741_v29  ;;  %v1738_v33 = vrot.slane %v1729_v28, %v3994_v48  ;;  %v2788_v29 = vld [vmem:[%s4171_s10 + $0x38] sm:$0xff] }
 0x5b9   :  { %v1746_v34 = vrot.slane %v1729_v28, %v1745_v30  ;;  %v2787_v30 = vld [vmem:[%s4171_s10 + $0x30] sm:$0xff] }
 0x5bb   :  { %2516 = vmatpush2.bf16.msra.mxu0 %v3133_v41  ;;  %2557 = vmatpush2.bf16.msra.mxu1 %v3135_v42 }
 0x5bc   :  { %2517 = vmatprep.subr.bf16.mxu0 %v3126_v44  ;;  %2558 = vmatprep.subr.bf16.mxu1 %v3128_v45 }
 0x5bf   :  { %2518 = vmatpush2.bf16.msra.mxu0 %v3125_v53  ;;  %2559 = vmatpush2.bf16.msra.mxu1 %v3127_v54 }
 0x5c0   :  { %2519 = vmatprep.subr.bf16.mxu0 %v3118_v55  ;;  %2560 = vmatprep.subr.bf16.mxu1 %v3120_v56  ;;  %v1749_v56 = vsub.s32 4, %v3875_v38 }
 0x5c2   :  { %v1750_v60 = vrot.slane %v1729_v28, %v1749_v56 }
 0x5c3   :  { %2520 = vmatpush2.bf16.msra.mxu0 %v3117_v61  ;;  %2561 = vmatpush2.bf16.msra.mxu1 %v3119_v62  ;;  %v1758_v61 = vrot.slane %v1729_v28, %v1757_v57  ;;  %v1754_v62 = vrot.slane %v1729_v28, %v1753_v58 }
 0x5c4   :  { %2521 = vmatprep.subr.bf16.mxu0 %v3110_v63  ;;  %2562 = vmatprep.subr.bf16.mxu1 %v3112_v0  ;;  %v1762_v63 = vrot.slane %v1729_v28, %v1761_v59  ;;  %v2789_v28 = vld [vmem:[%s4171_s10 + $0x40] sm:$0xff] }
 0x5c7   :  { %2522 = vmatpush2.bf16.msra.mxu0 %v3109_v5  ;;  %2563 = vmatpush2.bf16.msra.mxu1 %v3111_v49 }
 0x5c8   :  { %2523 = vmatprep.subr.bf16.mxu0 %v3102_v6  ;;  %2564 = vmatprep.subr.bf16.mxu1 %v3104_v7 }
 0x5cb   :  { %2524 = vmatpush2.bf16.msra.mxu0 %v3101_v8  ;;  %2565 = vmatpush2.bf16.msra.mxu1 %v3103_v9 }
 0x5cc   :  { %3296 = vmatprep.subr.mxu0 %v2666_v10 }
 0x5ce   :  { %2526 = vmatmul.mubr.bf16.vlgmr.msra.gmra.mxu0 %v4017_v12  ;;  %2567 = vmatmul.mubr.bf16.vlgmr.msra.gmra.mxu1 %v4017_v12  ;;  %v2663_v12 = vld [vmem:[%s4170_s9 + $0x60] sm:$0xff] }
 0x5cf   :  { %3297 = vmatpush3.msra.mxu0 %v2666_v10 }
 0x5d0   :  { %3298 = vmatprep.subr.mxu0 %v2665_v11 }
 0x5d1   :  { %3299 = vmatpush3.msra.mxu0 %v2665_v11 }
 0x5d2   :  { %3300 = vmatprep.subr.mxu0 %v2664_v13 }
 0x5d3   :  { %3301 = vmatpush3.msra.mxu0 %v2664_v13 }
 0x5d4   :  { %3302 = vmatprep.subr.mxu0 %v2663_v12 }
 0x5d5   :  { %3303 = vmatpush3.msra.mxu0 %v2663_v12 }
 0x5d6   :  { %3304 = vmatprep.subr.mxu0 %v2662_v14 }
 0x5d7   :  { %3305 = vmatpush3.msra.mxu0 %v2662_v14 }
 0x5d8   :  { %3306 = vmatprep.subr.mxu0 %v2661_v15 }
 0x5d9   :  { %3307 = vmatpush3.msra.mxu0 %v2661_v15 }
 0x5da   :  { %3308 = vmatprep.subr.mxu0 %v2660_v16 }
 0x5db   :  { %3309 = vmatpush3.msra.mxu0 %v2660_v16 }
 0x5dc   :  { %3310 = vmatprep.subr.mxu0 %v2659_v17 }
 0x5dd   :  { %3311 = vmatpush3.msra.mxu0 %v2659_v17 }
 0x5de   :  { %3312 = vmatprep.subr.mxu0 %v2658_v18 }
 0x5df   :  { %3313 = vmatpush3.msra.mxu0 %v2658_v18 }
 0x5e0   :  { %3314 = vmatprep.subr.mxu0 %v2657_v19 }
 0x5e1   :  { %3315 = vmatpush3.msra.mxu0 %v2657_v19 }
 0x5e2   :  { %3316 = vmatprep.subr.mxu0 %v2656_v20 }
 0x5e3   :  { %3317 = vmatpush3.msra.mxu0 %v2656_v20 }
 0x5e4   :  { %3318 = vmatprep.subr.mxu0 %v2655_v21 }
 0x5e5   :  { %3319 = vmatpush3.msra.mxu0 %v2655_v21 }
 0x5e6   :  { %3320 = vmatprep.subr.mxu0 %v2654_v22 }
 0x5e7   :  { %3321 = vmatpush3.msra.mxu0 %v2654_v22  ;;  %v2796_v22 = vld [vmem:[%s4171_s10 + $0x78] sm:$0xff] }
 0x5e8   :  { %3322 = vmatprep.subr.mxu0 %v2653_v23  ;;  %3331 = vmatprep.subr.mxu1 %v2796_v22 }
 0x5e9   :  { %3323 = vmatpush3.msra.mxu0 %v2653_v23  ;;  %3332 = vmatpush3.msra.mxu1 %v2796_v22  ;;  %v2795_v23 = vld [vmem:[%s4171_s10 + $0x70] sm:$0xff] }
 0x5ea   :  { %3324 = vmatprep.subr.mxu0 %v2652_v24  ;;  %3333 = vmatprep.subr.mxu1 %v2795_v23 }
 0x5eb   :  { %3325 = vmatpush3.msra.mxu0 %v2652_v24  ;;  %3334 = vmatpush3.msra.mxu1 %v2795_v23  ;;  %v2793_v24 = vld [vmem:[%s4171_s10 + $0x60] sm:$0xff] }
 0x5ec   :  { %3326 = vmatprep.subr.mxu0 %v2651_v25 }
 0x5ed   :  { %3327 = vmatpush3.msra.mxu0 %v2651_v25  ;;  %v2792_v25 = vld [vmem:[%s4171_s10 + $0x58] sm:$0xff] }
 0x64e   :  { %v2445_v35 = vpop.f32.mrf.mxu0  ;;  %v2486_v36 = vpop.f32.mrf.mxu1 }
 0x64f   :  { %v2446_v40 = vadd.f32 %v2445_v35, %v1734_v31  ;;  %v2487_v41 = vadd.f32 %v2486_v36, %v1742_v32  ;;  %v2786_v31 = vld [vmem:[%s4171_s10 + $0x28] sm:$0xff]  ;;  %v2785_v32 = vld [vmem:[%s4171_s10 + $0x20] sm:$0xff] }
 0x650   :  { %v2447_v37 = vpop.f32.mrf.mxu0  ;;  %v2488_v39 = vpop.f32.mrf.mxu1  ;;  %v2782_v35 = vld [vmem:[%s4171_s10 + $0x8] sm:$0xff]  ;;  %v2781_v36 = vld [vmem:[%s4171_s10] sm:$0xff] }
 0x651   :  { %v2448_v42 = vadd.f32 %v2447_v37, %v1738_v33  ;;  %v2489_v44 = vadd.f32 %v2488_v39, %v1746_v34  ;;  %v2784_v33 = vld [vmem:[%s4171_s10 + $0x18] sm:$0xff]  ;;  %v2783_v34 = vld [vmem:[%s4171_s10 + $0x10] sm:$0xff]  ;;  %v2667_v37 = vld [vmem:[%s4163_s2 + $0x6] ss:$0 sm:$0xff] }
 0x652   :  { %v2449_v45 = vpop.f32.mrf.mxu0  ;;  %v2490_v47 = vpop.f32.mrf.mxu1 }
 0x653   :  { %v2583_v50 = vcombine.low %v2446_v40, %v2448_v42  ;;  %v2584_v51 = vcombine.low %v2487_v41, %v2489_v44 }
 0x654   :  { %v2450_v52 = vpop.f32.mrf.mxu0  ;;  %v2491_v53 = vpop.f32.mrf.mxu1 }
 0x655   :  { %v2593_v46 = vrot.slane %v2583_v50, %v3878_v43  ;;  %v2600_v54 = vrot.slane %v2584_v51, %v3878_v43 }
 0x657   :  { %v2615_v48 = vcombine.low %v2593_v46, %v2600_v54  ;;  %v2616_v55 = vcombine.high %v2593_v46, %v2600_v54 }
 0x659   :  { %v2632_v16 = vrot.slane %v2616_v55, %v3878_v43  ;;  %v2625_v18 = vrot.slane %v2615_v48, %v3878_v43 }
 0x68e   :  { %v2527_v0 = vpop.f32.mrf.mxu0  ;;  %v2568_v1 = vpop.f32.mrf.mxu1 }
 0x68f   :  { %v2528_v4 = vadd.f32 %v2527_v0, %v1750_v60  ;;  %v2569_v5 = vadd.f32 %v2568_v1, %v1758_v61 }
 0x690   :  { %v2529_v2 = vpop.f32.mrf.mxu0  ;;  %v2570_v3 = vpop.f32.mrf.mxu1 }
 0x691   :  { %v2530_v49 = vadd.f32 %v2529_v2, %v1754_v62  ;;  %v2571_v6 = vadd.f32 %v2570_v3, %v1762_v63 }
 0x692   :  { %v2531_v7 = vpop.f32.mrf.mxu0  ;;  %v2572_v8 = vpop.f32.mrf.mxu1 }
 0x693   :  { %v2585_v9 = vcombine.low %v2528_v4, %v2530_v49  ;;  %v2586_v10 = vcombine.low %v2569_v5, %v2571_v6  ;;  %v2743_v5 = vld [vmem:[%s4163_s2 + $0x7] ss:$0 sm:$0xff]  ;;  %v2744_v7 = vld [vmem:[%s4163_s2 + $0x40] ss:$0 sm:$0xff] }
 0x694   :  { %v2532_v11 = vpop.f32.mrf.mxu0  ;;  %v2573_v13 = vpop.f32.mrf.mxu1 }
 0x695   :  { %v2607_v38 = vrot.slane %v2585_v9, %v3878_v43  ;;  %v2614_v12 = vrot.slane %v2586_v10, %v3878_v43 }
 0x697   :  { %v2617_v14 = vcombine.low %v2607_v38, %v2614_v12  ;;  %v2618_v15 = vcombine.high %v2607_v38, %v2614_v12 }
 0x699   :  { %v2646_v17 = vrot.slane %v2618_v15, %v3878_v43  ;;  %v2639_v19 = vrot.slane %v2617_v14, %v3878_v43  ;;  %v2794_v43 = vld [vmem:[%s4171_s10 + $0x68] sm:$0xff]  ;;  %v2797_v15 = vld [vmem:[%s4163_s2 + $0x41] ss:$0 sm:$0xff] }
 0x69a   :  { %3335 = vmatprep.subr.mxu1 %v2794_v43 }
 0x69b   :  { %v2647_v20 = vcombine.low %v2625_v18, %v2639_v19  ;;  %v2648_v21 = vcombine.low %v2632_v16, %v2646_v17  ;;  %3336 = vmatpush3.msra.mxu1 %v2794_v43 }
 0x69c   :  { %3337 = vmatprep.subr.mxu1 %v2793_v24 }
 0x69d   :  { %3328 = vmatprep.mubr.f32.mxu0 %v2647_v20  ;;  %3338 = vmatpush3.msra.mxu1 %v2793_v24 }
 0x69e   :  { %3329 = vmatmul.mubr.f32.vlgmr.msra.gmra.mxu0 %v2648_v21  ;;  %3339 = vmatprep.subr.mxu1 %v2792_v25 }
 0x69f   :  { %3340 = vmatpush3.msra.mxu1 %v2792_v25 }
 0x6a0   :  { %3341 = vmatprep.subr.mxu1 %v2791_v26 }
 0x6a1   :  { %3342 = vmatpush3.msra.mxu1 %v2791_v26 }
 0x6a2   :  { %3343 = vmatprep.subr.mxu1 %v2790_v27 }
 0x6a3   :  { %3344 = vmatpush3.msra.mxu1 %v2790_v27 }
 0x6a4   :  { %3345 = vmatprep.subr.mxu1 %v2789_v28 }
 0x6a5   :  { %3346 = vmatpush3.msra.mxu1 %v2789_v28 }
 0x6a6   :  { %3347 = vmatprep.subr.mxu1 %v2788_v29 }
 0x6a7   :  { %3348 = vmatpush3.msra.mxu1 %v2788_v29 }
 0x6a8   :  { %3349 = vmatprep.subr.mxu1 %v2787_v30 }
 0x6a9   :  { %3350 = vmatpush3.msra.mxu1 %v2787_v30 }
 0x6aa   :  { %3351 = vmatprep.subr.mxu1 %v2786_v31 }
 0x6ab   :  { %3352 = vmatpush3.msra.mxu1 %v2786_v31 }
 0x6ac   :  { %3353 = vmatprep.subr.mxu1 %v2785_v32 }
 0x6ad   :  { %3354 = vmatpush3.msra.mxu1 %v2785_v32 }
 0x6ae   :  { %3355 = vmatprep.subr.mxu1 %v2784_v33 }
 0x6af   :  { %3356 = vmatpush3.msra.mxu1 %v2784_v33 }
 0x6b0   :  { %3357 = vmatprep.subr.mxu1 %v2783_v34 }
 0x6b1   :  { %3358 = vmatpush3.msra.mxu1 %v2783_v34 }
 0x6b2   :  { %3359 = vmatprep.subr.mxu1 %v2782_v35 }
 0x6b3   :  { %3360 = vmatpush3.msra.mxu1 %v2782_v35 }
 0x6b4   :  { %3361 = vmatprep.subr.mxu1 %v2781_v36 }
 0x6b5   :  { %3362 = vmatpush3.msra.mxu1 %v2781_v36 }
 0x75e   :  { %v3330_v39 = vpop.f32.mrf.mxu0 }
 0x75f   :  { %v2740_v40 = vadd.f32 %v3330_v39, %v2667_v37 }
 0x760   :  { %v2734_v41 = vpop.f32.mrf.mxu0 }
 0x761   :  { %v2735_v42 = vadd.f32 %v2734_v41, %v2667_v37  ;;  %v2754_v44 = vmul.f32 %v2740_v40, %v2740_v40 }
 0x763   :  { %v2745_v45 = vadd.f32 %v2740_v40, %v2735_v42  ;;  %v2753_v47 = vmul.f32 %v2735_v42, %v2735_v42 }
 0x765   :  { %v2746_v50 = vrot.slane %v2745_v45, 4  ;;  %v2755_v51 = vadd.f32 %v2754_v44, %v2753_v47 }
 0x767   :  { %v2747_v52 = vadd.f32 %v2746_v50, %v2745_v45  ;;  %v2756_v53 = vrot.slane %v2755_v51, 4 }
 0x769   :  { %v2748_v46 = vrot.slane %v2747_v52, 2  ;;  %v2757_v54 = vadd.f32 %v2756_v53, %v2755_v51 }
 0x76b   :  { %v2749_v48 = vadd.f32 %v2748_v46, %v2747_v52  ;;  %v2758_v55 = vrot.slane %v2757_v54, 2 }
 0x76d   :  { %v2750_v56 = vrot.slane %v2749_v48, 1  ;;  %v2759_v57 = vadd.f32 %v2758_v55, %v2757_v54 }
 0x76f   :  { %v2751_v58 = vadd.f32 %v2750_v56, %v2749_v48  ;;  %v2760_v59 = vrot.slane %v2759_v57, 1 }
 0x771   :  { %v2752_v60 = vmul.f32 0.0625, %v2751_v58  ;;  %v2761_v61 = vadd.f32 %v2760_v59, %v2759_v57 }
 0x773   :  { %v2762_v62 = vmul.f32 0.0625, %v2761_v61  ;;  %v2763_v63 = vmul.f32 %v2752_v60, %v2752_v60  ;;  %v2765_v2 = vsub.f32 %v2735_v42, %v2752_v60  ;;  %v2766_v3 = vsub.f32 %v2740_v40, %v2752_v60 }
 0x775   :  { %v2764_v0 = vsub.f32 %v2762_v62, %v2763_v63 }
 0x777   :  { %v2767_v1 = vadd.f32 1e-05, %v2764_v0 }
 0x779   :  { %3594 = vrsqrt.f32 %v2767_v1 }
 0x786   :  { %v3595_v4 = vpop.eup %3594 }
 0x787   :  { %v2769_v49 = vmul.f32 %v3595_v4, %v2765_v2  ;;  %v2770_v6 = vmul.f32 %v3595_v4, %v2766_v3 }
 0x789   :  { %v2771_v8 = vmul.f32 %v2769_v49, %v2743_v5  ;;  %v2772_v9 = vmul.f32 %v2770_v6, %v2743_v5 }
 0x78b   :  { %v2773_v10 = vadd.f32 %v2771_v8, %v2744_v7  ;;  %v2774_v11 = vadd.f32 %v2772_v9, %v2744_v7 }
 0x78d   :  { %vm2775_vm7 = vcmp.gt.f32.partialorder %v2773_v10, 0.0  ;;  %v2777_v13 = vmul.f32 0.2, %v2773_v10  ;;  %vm2776_vm8 = vcmp.gt.f32.partialorder %v2774_v11, 0.0  ;;  %v2778_v38 = vmul.f32 0.2, %v2774_v11 }
 0x78f   :  { %v2779_v12 = vsel %vm2775_vm7, %v2773_v10, %v2777_v13  ;;  %v2780_v14 = vsel %vm2776_vm8, %v2774_v11, %v2778_v38 }
 0x790   :  { %3363 = vmatprep.mubr.f32.mxu1 %v2779_v12 }
 0x791   :  { %3364 = vmatmul.mubr.f32.vlgmr.msra.gmra.mxu1 %v2780_v14 }
 0x851   :  { %v3365_v16 = vpop.f32.mrf.mxu1 }
 0x852   :  { %v2870_v17 = vadd.f32 %v3365_v16, %v2797_v15 }
 0x853   :  { %v2864_v18 = vpop.f32.mrf.mxu1 }
 0x854   :  { %2874 = vst.msk [vmem:[#allocation10 + $0x8] sm:$0xff] %vm101_vm0, %v2870_v17  ;;  %v2865_v19 = vadd.f32 %v2864_v18, %v2797_v15 }
 0x856   :  { %2873 = vst.msk [vmem:[#allocation10] sm:$0xff] %vm101_vm0, %v2865_v19 }
 0x857   :  { %3687 = shalt.err (!%p3684_p10)
}
 0x858   :  { %2886 = dma.vmem_to_hbm [thread:$0]  %s2881_s0, 256, %s4172_s11, [#allocation4], %s3706_s26, %s3706_s26, %s3707_s27  }
 0x859   :  { %3702 = dma.done.wait [#allocation4], 256  }
 0x85a   :  { %3703 = vsyncadd [#allocation4], 4294967040 }
 0x85b   :  { %2894 = vsyncpa [#allocation3], 1 }
 0x85c   :  { %2895 = vsyncpa [#allocation6], 1 }
 0x85d   :  { %2896 = vsyncpa [#allocation9], 1 }
 0x85e   :  { %2897 = vsyncpa [#allocation4], 1 }

</bundles_post_ra>
